<compile_context>
chip_gen: v6e
topology: v6e:2x2x1
jax: 0.10.0
libtpu: 0.0.40
codegen_flags: <defaults>
</compile_context>

<pallas_src>
import functools

import jax
import jax.numpy as jnp
from jax import lax
from jax.experimental import pallas as pl
from jax.experimental.pallas import tpu as pltpu


def conv1d_lstm_kernel(x_ref,
                       w1_ref, b1_ref, w2_ref, b2_ref, w3_ref, b3_ref,
                       wih1_ref, bg1_ref, whh1_ref,
                       w2f_ref, bg2_ref,
                       wfc_ref, bfc_ref,
                       out_ref,
                       xp1_ref,
                       *, L, B_pad, H):
    f32 = jnp.float32
    bf16 = jnp.bfloat16

    # ---- conv stack: kernel_size=1 conv (+ folded BN) + ReLU == row-wise GEMMs ----
    # x_ref is time-major and pre-flattened in the wrapper: (L * B_pad, C_in), bf16.
    h = x_ref[...]
    h = jnp.maximum(jnp.dot(h, w1_ref[...], preferred_element_type=f32) + b1_ref[...], 0.0)
    h = jnp.maximum(jnp.dot(h.astype(bf16), w2_ref[...], preferred_element_type=f32) + b2_ref[...], 0.0)
    h = jnp.maximum(jnp.dot(h.astype(bf16), w3_ref[...], preferred_element_type=f32) + b3_ref[...], 0.0)
    # AvgPool1d(kernel_size=1) and Dropout (eval mode) are identity.

    # ---- LSTM1 input projection for all timesteps at once (bias folded in) ----
    xp1_ref[...] = (jnp.dot(h.astype(bf16), wih1_ref[...], preferred_element_type=f32)
                    + bg1_ref[...])

    # Loop-invariant operands hoisted out of the recurrence.
    whh1 = whh1_ref[...]                                   # (H, 4H)   bf16
    w2f = w2f_ref[...]                                     # (2H, 4H)  bf16  (wih2 ; whh2 fused)
    bg2 = jnp.broadcast_to(bg2_ref[...], (B_pad, 4 * H))   # broadcast once, not per step
    lane = lax.broadcasted_iota(jnp.int32, (B_pad, 4 * H), 1)
    g_mask = (lane >= 2 * H) & (lane < 3 * H)              # tanh lanes (PyTorch gate order i,f,g,o)

    def cell(gates, c):
        # one full-width tanh + sigmoid launch selected by lane mask
        act = jnp.where(g_mask, jnp.tanh(gates), jax.nn.sigmoid(gates))
        i = act[:, 0 * H:1 * H]
        f = act[:, 1 * H:2 * H]
        g = act[:, 2 * H:3 * H]
        o = act[:, 3 * H:4 * H]
        c_new = f * c + i * g
        h_new = o * jnp.tanh(c_new)
        return h_new, c_new

    def step(t, state):
        h1, c1, h2, c2 = state
        row = pl.multiple_of(t * B_pad, B_pad)
        xt = xp1_ref[pl.ds(row, B_pad), :]                 # (B_pad, 4H), aligned leading slice
        g1 = xt + jnp.dot(h1.astype(bf16), whh1, preferred_element_type=f32)
        h1, c1 = cell(g1, c1)
        h12 = jnp.concatenate([h1, h2], axis=1).astype(bf16)       # (B_pad, 2H)
        g2 = jnp.dot(h12, w2f, preferred_element_type=f32) + bg2   # fused ih + hh matmul
        h2, c2 = cell(g2, c2)
        return h1, c1, h2, c2

    UNROLL = 2

    def body(k, state):
        t0 = k * UNROLL
        for u in range(UNROLL):            # bounded static unroll inside the fori_loop body
            state = step(t0 + u, state)
        return state

    zero = jnp.zeros((B_pad, H), f32)
    state = (zero, zero, zero, zero)
    n_main = (L // UNROLL) * UNROLL
    state = lax.fori_loop(0, L // UNROLL, body, state)
    for t in range(n_main, L):             # static remainder if L is odd
        state = step(jnp.int32(t), state)
    _, _, h2, _ = state

    # ---- final FC (classes padded to a lane-dense 128) + log_softmax ----
    logits = jnp.dot(h2, wfc_ref[...], preferred_element_type=f32) + bfc_ref[...]
    m = jnp.max(logits, axis=1, keepdims=True)
    lse = m + jnp.log(jnp.sum(jnp.exp(logits - m), axis=1, keepdims=True))
    out_ref[...] = logits - lse


def fold_bn_into_conv(w, b, gamma, beta, mean, var, eps=1e-5):
    """Fold eval-mode BatchNorm1d into a kernel_size=1 Conv1d.

    w: (C_out, C_in, 1), b: (C_out,). Returns (C_in, C_out) bf16 matmul weight and
    (1, C_out) f32 bias for the channels-last layout used by the kernel."""
    scale = gamma / jnp.sqrt(var + eps)              # (C_out,)
    w2d = (w[:, :, 0] * scale[:, None]).T            # (C_in, C_out)
    b2d = scale * (b - mean) + beta                  # (C_out,)
    return w2d.astype(jnp.bfloat16), b2d[None, :].astype(jnp.float32)


def conv1d_lstm_forward(x_ncl, params):
    """x_ncl: (B, C_in, L) float32 — PyTorch NCL layout. Returns (B, num_classes)."""
    B, C_in, L = x_ncl.shape
    H = params["lstm1_whh"].shape[1]                 # 64
    num_classes = params["fc_w"].shape[0]

    B_pad = ((B + 7) // 8) * 8                       # fill the f32 sublanes
    NC_PAD = ((num_classes + 127) // 128) * 128      # lane-dense output store

    # time-major, batch-padded, flattened OUTSIDE the kernel (no in-kernel reshapes)
    x_lbc = jnp.transpose(x_ncl, (2, 0, 1))          # (L, B, C_in)
    x_lbc = jnp.pad(x_lbc, ((0, 0), (0, B_pad - B), (0, 0)))
    x_flat = x_lbc.reshape(L * B_pad, C_in).astype(jnp.bfloat16)

    w1, b1 = fold_bn_into_conv(params["conv1_w"], params["conv1_b"],
                               params["bn1_g"], params["bn1_b"],
                               params["bn1_m"], params["bn1_v"])
    w2, b2 = fold_bn_into_conv(params["conv2_w"], params["conv2_b"],
                               params["bn2_g"], params["bn2_b"],
                               params["bn2_m"], params["bn2_v"])
    w3, b3 = fold_bn_into_conv(params["conv3_w"], params["conv3_b"],
                               params["bn3_g"], params["bn3_b"],
                               params["bn3_m"], params["bn3_v"])

    wih1 = params["lstm1_wih"].T.astype(jnp.bfloat16)     # (32, 4H)
    bg1 = (params["lstm1_bih"] + params["lstm1_bhh"])[None, :].astype(jnp.float32)
    whh1 = params["lstm1_whh"].T.astype(jnp.bfloat16)     # (H, 4H)

    # fuse LSTM2's input and hidden projections: [h1 | h2] @ [wih2.T ; whh2.T]
    w2f = jnp.concatenate([params["lstm2_wih"].T, params["lstm2_whh"].T],
                          axis=0).astype(jnp.bfloat16)    # (2H, 4H)
    bg2 = (params["lstm2_bih"] + params["lstm2_bhh"])[None, :].astype(jnp.float32)

    # pad FC to 128 output lanes; padded logits get a huge negative bias so they
    # vanish from the softmax; real classes are sliced back out below.
    wfc = jnp.zeros((H, NC_PAD), jnp.float32).at[:, :num_classes].set(params["fc_w"].T)
    bfc = jnp.full((1, NC_PAD), -1e30, jnp.float32).at[0, :num_classes].set(params["fc_b"])

    kernel_inputs = (x_flat, w1, b1, w2, b2, w3, b3,
                     wih1, bg1, whh1, w2f, bg2, wfc, bfc)

    kernel = functools.partial(conv1d_lstm_kernel, L=L, B_pad=B_pad, H=H)
    out_pad = pl.pallas_call(
        kernel,
        out_shape=jax.ShapeDtypeStruct((B_pad, NC_PAD), jnp.float32),
        in_specs=[pl.BlockSpec(memory_space=pltpu.MemorySpace.VMEM)] * len(kernel_inputs),
        out_specs=pl.BlockSpec(memory_space=pltpu.MemorySpace.VMEM),
        scratch_shapes=[pltpu.VMEM((L * B_pad, 4 * H), jnp.float32)],
        compiler_params=pltpu.CompilerParams(vmem_limit_bytes=32 * 1024 * 1024),
    )(*kernel_inputs)
    # TODO(synk): when B*L grows, add a grid over batch/rows with
    # dimension_semantics=("parallel",) so v7x's two TensorCores split the work
    # and the conv-stack intermediate stays tiled within VMEM.
    return out_pad[:B, :num_classes]


def init_params(key, c_in, num_classes):
    ks = jax.random.split(key, 32)
    n = iter(range(32))
    rnd = lambda shape, s=0.1: s * jax.random.normal(ks[next(n)], shape, jnp.float32)
    p = {}
    # conv1 / bn1
    p["conv1_w"] = rnd((128, c_in, 1));  p["conv1_b"] = rnd((128,))
    p["bn1_g"] = 1.0 + rnd((128,));      p["bn1_b"] = rnd((128,))
    p["bn1_m"] = rnd((128,));            p["bn1_v"] = 1.0 + 0.1 * jax.random.uniform(ks[next(n)], (128,))
    # conv2 / bn2
    p["conv2_w"] = rnd((64, 128, 1));    p["conv2_b"] = rnd((64,))
    p["bn2_g"] = 1.0 + rnd((64,));       p["bn2_b"] = rnd((64,))
    p["bn2_m"] = rnd((64,));             p["bn2_v"] = 1.0 + 0.1 * jax.random.uniform(ks[next(n)], (64,))
    # conv3 / bn3
    p["conv3_w"] = rnd((32, 64, 1));     p["conv3_b"] = rnd((32,))
    p["bn3_g"] = 1.0 + rnd((32,));       p["bn3_b"] = rnd((32,))
    p["bn3_m"] = rnd((32,));             p["bn3_v"] = 1.0 + 0.1 * jax.random.uniform(ks[next(n)], (32,))
    # lstm1 (input 32, hidden 64) — PyTorch gate order i, f, g, o
    p["lstm1_wih"] = rnd((256, 32));     p["lstm1_whh"] = rnd((256, 64))
    p["lstm1_bih"] = rnd((256,));        p["lstm1_bhh"] = rnd((256,))
    # lstm2 (input 64, hidden 64)
    p["lstm2_wih"] = rnd((256, 64));     p["lstm2_whh"] = rnd((256, 64))
    p["lstm2_bih"] = rnd((256,));        p["lstm2_bhh"] = rnd((256,))
    # fc
    p["fc_w"] = rnd((num_classes, 64));  p["fc_b"] = rnd((num_classes,))
    return p


if __name__ == "__main__":
    B, C_IN, L, NUM_CLASSES = 2, 4, 16, 10
    key = jax.random.PRNGKey(0)
    k_param, k_x = jax.random.split(key)
    params = init_params(k_param, C_IN, NUM_CLASSES)
    x = jax.random.normal(k_x, (B, C_IN, L), jnp.float32)   # PyTorch NCL input

    out = conv1d_lstm_forward(x, params)
    out = jax.block_until_ready(out)

    assert out.shape == (B, NUM_CLASSES)
    assert bool(jnp.all(jnp.isfinite(out)))
    # log_softmax rows should (approximately) exponentiate-sum to 1
    assert bool(jnp.allclose(jnp.sum(jnp.exp(out), axis=1), 1.0, atol=1e-3))
    print("KERNEL_OK")
</pallas_src>

<mosaic_0001>
module attributes {stable_mosaic.version = 11 : i64} {
  func.func @conv1d_lstm_kernel(%arg0: memref<128x4xbf16, #tpu.memory_space<vmem>>, %arg1: memref<4x128xbf16, #tpu.memory_space<vmem>>, %arg2: memref<1x128xf32, #tpu.memory_space<vmem>>, %arg3: memref<128x64xbf16, #tpu.memory_space<vmem>>, %arg4: memref<1x64xf32, #tpu.memory_space<vmem>>, %arg5: memref<64x32xbf16, #tpu.memory_space<vmem>>, %arg6: memref<1x32xf32, #tpu.memory_space<vmem>>, %arg7: memref<32x256xbf16, #tpu.memory_space<vmem>>, %arg8: memref<1x256xf32, #tpu.memory_space<vmem>>, %arg9: memref<64x256xbf16, #tpu.memory_space<vmem>>, %arg10: memref<128x256xbf16, #tpu.memory_space<vmem>>, %arg11: memref<1x256xf32, #tpu.memory_space<vmem>>, %arg12: memref<64x128xf32, #tpu.memory_space<vmem>>, %arg13: memref<1x128xf32, #tpu.memory_space<vmem>>, %arg14: memref<8x128xf32, #tpu.memory_space<vmem>>, %arg15: memref<128x256xf32, #tpu.memory_space<vmem>>) attributes {dimension_semantics = [], scalar_prefetch = 0 : i64, scratch_operands = 1 : i64, tpu.core_type = #tpu.core_type<tc>} {
    %c0 = arith.constant 0 : index
    %c0_0 = arith.constant 0 : index
    %0 = vector.load %arg0[%c0, %c0_0] : memref<128x4xbf16, #tpu.memory_space<vmem>>, vector<128x4xbf16>
    %c0_1 = arith.constant 0 : index
    %c0_2 = arith.constant 0 : index
    %1 = vector.load %arg1[%c0_1, %c0_2] : memref<4x128xbf16, #tpu.memory_space<vmem>>, vector<4x128xbf16>
    %cst = arith.constant dense<0.000000e+00> : vector<128x128xf32>
    %2 = tpu.matmul %0, %1, %cst {dimension_numbers = #tpu.dot_dimension_numbers<[1], [0], [0], [1], [0, 0, 1, 1], [], []>} : vector<128x4xbf16>, vector<4x128xbf16>, vector<128x128xf32> -> vector<128x128xf32>
    %c0_3 = arith.constant 0 : index
    %c0_4 = arith.constant 0 : index
    %3 = vector.load %arg2[%c0_3, %c0_4] : memref<1x128xf32, #tpu.memory_space<vmem>>, vector<1x128xf32>
    %4 = vector.broadcast %3 : vector<1x128xf32> to vector<128x128xf32>
    %5 = arith.addf %2, %4 : vector<128x128xf32>
    %cst_5 = arith.constant 0.000000e+00 : f32
    %6 = vector.broadcast %cst_5 : f32 to vector<128x128xf32>
    %7 = arith.maximumf %5, %6 : vector<128x128xf32>
    %8 = arith.truncf %7 : vector<128x128xf32> to vector<128x128xbf16>
    %c0_6 = arith.constant 0 : index
    %c0_7 = arith.constant 0 : index
    %9 = vector.load %arg3[%c0_6, %c0_7] : memref<128x64xbf16, #tpu.memory_space<vmem>>, vector<128x64xbf16>
    %cst_8 = arith.constant dense<0.000000e+00> : vector<128x64xf32>
    %10 = tpu.matmul %8, %9, %cst_8 {dimension_numbers = #tpu.dot_dimension_numbers<[1], [0], [0], [1], [0, 0, 1, 1], [], []>} : vector<128x128xbf16>, vector<128x64xbf16>, vector<128x64xf32> -> vector<128x64xf32>
    %c0_9 = arith.constant 0 : index
    %c0_10 = arith.constant 0 : index
    %11 = vector.load %arg4[%c0_9, %c0_10] : memref<1x64xf32, #tpu.memory_space<vmem>>, vector<1x64xf32>
    %12 = vector.broadcast %11 : vector<1x64xf32> to vector<128x64xf32>
    %13 = arith.addf %10, %12 : vector<128x64xf32>
    %cst_11 = arith.constant 0.000000e+00 : f32
    %14 = vector.broadcast %cst_11 : f32 to vector<128x64xf32>
    %15 = arith.maximumf %13, %14 : vector<128x64xf32>
    %16 = arith.truncf %15 : vector<128x64xf32> to vector<128x64xbf16>
    %c0_12 = arith.constant 0 : index
    %c0_13 = arith.constant 0 : index
    %17 = vector.load %arg5[%c0_12, %c0_13] : memref<64x32xbf16, #tpu.memory_space<vmem>>, vector<64x32xbf16>
    %cst_14 = arith.constant dense<0.000000e+00> : vector<128x32xf32>
    %18 = tpu.matmul %16, %17, %cst_14 {dimension_numbers = #tpu.dot_dimension_numbers<[1], [0], [0], [1], [0, 0, 1, 1], [], []>} : vector<128x64xbf16>, vector<64x32xbf16>, vector<128x32xf32> -> vector<128x32xf32>
    %c0_15 = arith.constant 0 : index
    %c0_16 = arith.constant 0 : index
    %19 = vector.load %arg6[%c0_15, %c0_16] : memref<1x32xf32, #tpu.memory_space<vmem>>, vector<1x32xf32>
    %20 = vector.broadcast %19 : vector<1x32xf32> to vector<128x32xf32>
    %21 = arith.addf %18, %20 : vector<128x32xf32>
    %cst_17 = arith.constant 0.000000e+00 : f32
    %22 = vector.broadcast %cst_17 : f32 to vector<128x32xf32>
    %23 = arith.maximumf %21, %22 : vector<128x32xf32>
    %24 = arith.truncf %23 : vector<128x32xf32> to vector<128x32xbf16>
    %c0_18 = arith.constant 0 : index
    %c0_19 = arith.constant 0 : index
    %25 = vector.load %arg7[%c0_18, %c0_19] : memref<32x256xbf16, #tpu.memory_space<vmem>>, vector<32x256xbf16>
    %cst_20 = arith.constant dense<0.000000e+00> : vector<128x256xf32>
    %26 = tpu.matmul %24, %25, %cst_20 {dimension_numbers = #tpu.dot_dimension_numbers<[1], [0], [0], [1], [0, 0, 1, 1], [], []>} : vector<128x32xbf16>, vector<32x256xbf16>, vector<128x256xf32> -> vector<128x256xf32>
    %c0_21 = arith.constant 0 : index
    %c0_22 = arith.constant 0 : index
    %27 = vector.load %arg8[%c0_21, %c0_22] : memref<1x256xf32, #tpu.memory_space<vmem>>, vector<1x256xf32>
    %28 = vector.broadcast %27 : vector<1x256xf32> to vector<128x256xf32>
    %29 = arith.addf %26, %28 : vector<128x256xf32>
    %c0_23 = arith.constant 0 : index
    %c0_24 = arith.constant 0 : index
    %30 = vector.load %arg15[%c0_23, %c0_24] : memref<128x256xf32, #tpu.memory_space<vmem>>, vector<128x256xf32>
    tpu.vector_store %arg15[%c0_23, %c0_24], %29 {strides = array<i32>} : memref<128x256xf32, #tpu.memory_space<vmem>>, vector<128x256xf32>,
    %c0_25 = arith.constant 0 : index
    %c0_26 = arith.constant 0 : index
    %31 = vector.load %arg9[%c0_25, %c0_26] : memref<64x256xbf16, #tpu.memory_space<vmem>>, vector<64x256xbf16>
    %c0_27 = arith.constant 0 : index
    %c0_28 = arith.constant 0 : index
    %32 = vector.load %arg10[%c0_27, %c0_28] : memref<128x256xbf16, #tpu.memory_space<vmem>>, vector<128x256xbf16>
    %c0_29 = arith.constant 0 : index
    %c0_30 = arith.constant 0 : index
    %33 = vector.load %arg11[%c0_29, %c0_30] : memref<1x256xf32, #tpu.memory_space<vmem>>, vector<1x256xf32>
    %34 = vector.shape_cast %33 : vector<1x256xf32> to vector<1x256xf32>
    %35 = vector.broadcast %34 : vector<1x256xf32> to vector<8x256xf32>
    %36 = tpu.iota {dimensions = array<i32: 1>} : vector<8x256xi32>
    %c128_i32 = arith.constant 128 : i32
    %37 = vector.broadcast %c128_i32 : i32 to vector<8x256xi32>
    %38 = arith.cmpi sge, %36, %37 : vector<8x256xi32>
    %c192_i32 = arith.constant 192 : i32
    %39 = vector.broadcast %c192_i32 : i32 to vector<8x256xi32>
    %40 = arith.cmpi slt, %36, %39 : vector<8x256xi32>
    %41 = arith.andi %38, %40 : vector<8x256xi1>
    %cst_31 = arith.constant 0.000000e+00 : f32
    %42 = vector.broadcast %cst_31 : f32 to vector<8x64xf32>
    %c0_i32 = arith.constant 0 : i32
    %c8_i32 = arith.constant 8 : i32
    %43 = arith.addi %c0_i32, %c8_i32 : i32
    %c1_i32 = arith.constant 1 : i32
    %44:4 = scf.for %arg16 = %c0_i32 to %43 step %c1_i32 iter_args(%arg17 = %42, %arg18 = %42, %arg19 = %42, %arg20 = %42) -> (vector<8x64xf32>, vector<8x64xf32>, vector<8x64xf32>, vector<8x64xf32>)  : i32 {
      %c2_i32 = arith.constant 2 : i32
      %62 = arith.muli %arg16, %c2_i32 : i32
      %c0_i32_42 = arith.constant 0 : i32
      %63 = arith.addi %62, %c0_i32_42 : i32
      %c8_i32_43 = arith.constant 8 : i32
      %64 = arith.muli %63, %c8_i32_43 : i32
      %65 = tpu.assume_multiple %64, 8 : i32
      %66 = arith.index_cast %65 : i32 to index
      %c0_44 = arith.constant 0 : index
      %67 = vector.load %arg15[%66, %c0_44] : memref<128x256xf32, #tpu.memory_space<vmem>>, vector<8x256xf32>
      %68 = arith.truncf %arg17 : vector<8x64xf32> to vector<8x64xbf16>
      %cst_45 = arith.constant dense<0.000000e+00> : vector<8x256xf32>
      %69 = tpu.matmul %68, %31, %cst_45 {dimension_numbers = #tpu.dot_dimension_numbers<[1], [0], [0], [1], [0, 0, 1, 1], [], []>} : vector<8x64xbf16>, vector<64x256xbf16>, vector<8x256xf32> -> vector<8x256xf32>
      %70 = arith.addf %67, %69 : vector<8x256xf32>
      %71 = math.tanh %70 : vector<8x256xf32>
      %72 = arith.negf %70 : vector<8x256xf32>
      %73 = math.exp %72 : vector<8x256xf32>
      %cst_46 = arith.constant 1.000000e+00 : f32
      %74 = vector.broadcast %cst_46 : f32 to vector<8x256xf32>
      %75 = arith.addf %74, %73 : vector<8x256xf32>
      %76 = arith.divf %74, %75 : vector<8x256xf32>
      %77 = arith.select %41, %71, %76 : vector<8x256xi1>, vector<8x256xf32>
      %78 = vector.extract_strided_slice %77 {offsets = [0, 0], sizes = [8, 64], strides = [1, 1]} : vector<8x256xf32> to vector<8x64xf32>
      %79 = vector.extract_strided_slice %77 {offsets = [0, 64], sizes = [8, 64], strides = [1, 1]} : vector<8x256xf32> to vector<8x64xf32>
      %80 = vector.extract_strided_slice %77 {offsets = [0, 128], sizes = [8, 64], strides = [1, 1]} : vector<8x256xf32> to vector<8x64xf32>
      %81 = vector.extract_strided_slice %77 {offsets = [0, 192], sizes = [8, 64], strides = [1, 1]} : vector<8x256xf32> to vector<8x64xf32>
      %82 = arith.mulf %79, %arg18 : vector<8x64xf32>
      %83 = arith.mulf %78, %80 : vector<8x64xf32>
      %84 = arith.addf %82, %83 : vector<8x64xf32>
      %85 = math.tanh %84 : vector<8x64xf32>
      %86 = arith.mulf %81, %85 : vector<8x64xf32>
      %87 = tpu.concatenate %86, %arg19 in 1 : vector<8x64xf32>, vector<8x64xf32> -> vector<8x128xf32>
      %88 = arith.truncf %87 : vector<8x128xf32> to vector<8x128xbf16>
      %cst_47 = arith.constant dense<0.000000e+00> : vector<8x256xf32>
      %89 = tpu.matmul %88, %32, %cst_47 {dimension_numbers = #tpu.dot_dimension_numbers<[1], [0], [0], [1], [0, 0, 1, 1], [], []>} : vector<8x128xbf16>, vector<128x256xbf16>, vector<8x256xf32> -> vector<8x256xf32>
      %90 = arith.addf %89, %35 : vector<8x256xf32>
      %91 = math.tanh %90 : vector<8x256xf32>
      %92 = arith.negf %90 : vector<8x256xf32>
      %93 = math.exp %92 : vector<8x256xf32>
      %cst_48 = arith.constant 1.000000e+00 : f32
      %94 = vector.broadcast %cst_48 : f32 to vector<8x256xf32>
      %95 = arith.addf %94, %93 : vector<8x256xf32>
      %96 = arith.divf %94, %95 : vector<8x256xf32>
      %97 = arith.select %41, %91, %96 : vector<8x256xi1>, vector<8x256xf32>
      %98 = vector.extract_strided_slice %97 {offsets = [0, 0], sizes = [8, 64], strides = [1, 1]} : vector<8x256xf32> to vector<8x64xf32>
      %99 = vector.extract_strided_slice %97 {offsets = [0, 64], sizes = [8, 64], strides = [1, 1]} : vector<8x256xf32> to vector<8x64xf32>
      %100 = vector.extract_strided_slice %97 {offsets = [0, 128], sizes = [8, 64], strides = [1, 1]} : vector<8x256xf32> to vector<8x64xf32>
      %101 = vector.extract_strided_slice %97 {offsets = [0, 192], sizes = [8, 64], strides = [1, 1]} : vector<8x256xf32> to vector<8x64xf32>
      %102 = arith.mulf %99, %arg20 : vector<8x64xf32>
      %103 = arith.mulf %98, %100 : vector<8x64xf32>
      %104 = arith.addf %102, %103 : vector<8x64xf32>
      %105 = math.tanh %104 : vector<8x64xf32>
      %106 = arith.mulf %101, %105 : vector<8x64xf32>
      %c1_i32_49 = arith.constant 1 : i32
      %107 = arith.addi %62, %c1_i32_49 : i32
      %c8_i32_50 = arith.constant 8 : i32
      %108 = arith.muli %107, %c8_i32_50 : i32
      %109 = tpu.assume_multiple %108, 8 : i32
      %110 = arith.index_cast %109 : i32 to index
      %c0_51 = arith.constant 0 : index
      %111 = vector.load %arg15[%110, %c0_51] : memref<128x256xf32, #tpu.memory_space<vmem>>, vector<8x256xf32>
      %112 = arith.truncf %86 : vector<8x64xf32> to vector<8x64xbf16>
      %cst_52 = arith.constant dense<0.000000e+00> : vector<8x256xf32>
      %113 = tpu.matmul %112, %31, %cst_52 {dimension_numbers = #tpu.dot_dimension_numbers<[1], [0], [0], [1], [0, 0, 1, 1], [], []>} : vector<8x64xbf16>, vector<64x256xbf16>, vector<8x256xf32> -> vector<8x256xf32>
      %114 = arith.addf %111, %113 : vector<8x256xf32>
      %115 = math.tanh %114 : vector<8x256xf32>
      %116 = arith.negf %114 : vector<8x256xf32>
      %117 = math.exp %116 : vector<8x256xf32>
      %cst_53 = arith.constant 1.000000e+00 : f32
      %118 = vector.broadcast %cst_53 : f32 to vector<8x256xf32>
      %119 = arith.addf %118, %117 : vector<8x256xf32>
      %120 = arith.divf %118, %119 : vector<8x256xf32>
      %121 = arith.select %41, %115, %120 : vector<8x256xi1>, vector<8x256xf32>
      %122 = vector.extract_strided_slice %121 {offsets = [0, 0], sizes = [8, 64], strides = [1, 1]} : vector<8x256xf32> to vector<8x64xf32>
      %123 = vector.extract_strided_slice %121 {offsets = [0, 64], sizes = [8, 64], strides = [1, 1]} : vector<8x256xf32> to vector<8x64xf32>
      %124 = vector.extract_strided_slice %121 {offsets = [0, 128], sizes = [8, 64], strides = [1, 1]} : vector<8x256xf32> to vector<8x64xf32>
      %125 = vector.extract_strided_slice %121 {offsets = [0, 192], sizes = [8, 64], strides = [1, 1]} : vector<8x256xf32> to vector<8x64xf32>
      %126 = arith.mulf %123, %84 : vector<8x64xf32>
      %127 = arith.mulf %122, %124 : vector<8x64xf32>
      %128 = arith.addf %126, %127 : vector<8x64xf32>
      %129 = math.tanh %128 : vector<8x64xf32>
      %130 = arith.mulf %125, %129 : vector<8x64xf32>
      %131 = tpu.concatenate %130, %106 in 1 : vector<8x64xf32>, vector<8x64xf32> -> vector<8x128xf32>
      %132 = arith.truncf %131 : vector<8x128xf32> to vector<8x128xbf16>
      %cst_54 = arith.constant dense<0.000000e+00> : vector<8x256xf32>
      %133 = tpu.matmul %132, %32, %cst_54 {dimension_numbers = #tpu.dot_dimension_numbers<[1], [0], [0], [1], [0, 0, 1, 1], [], []>} : vector<8x128xbf16>, vector<128x256xbf16>, vector<8x256xf32> -> vector<8x256xf32>
      %134 = arith.addf %133, %35 : vector<8x256xf32>
      %135 = math.tanh %134 : vector<8x256xf32>
      %136 = arith.negf %134 : vector<8x256xf32>
      %137 = math.exp %136 : vector<8x256xf32>
      %cst_55 = arith.constant 1.000000e+00 : f32
      %138 = vector.broadcast %cst_55 : f32 to vector<8x256xf32>
      %139 = arith.addf %138, %137 : vector<8x256xf32>
      %140 = arith.divf %138, %139 : vector<8x256xf32>
      %141 = arith.select %41, %135, %140 : vector<8x256xi1>, vector<8x256xf32>
      %142 = vector.extract_strided_slice %141 {offsets = [0, 0], sizes = [8, 64], strides = [1, 1]} : vector<8x256xf32> to vector<8x64xf32>
      %143 = vector.extract_strided_slice %141 {offsets = [0, 64], sizes = [8, 64], strides = [1, 1]} : vector<8x256xf32> to vector<8x64xf32>
      %144 = vector.extract_strided_slice %141 {offsets = [0, 128], sizes = [8, 64], strides = [1, 1]} : vector<8x256xf32> to vector<8x64xf32>
      %145 = vector.extract_strided_slice %141 {offsets = [0, 192], sizes = [8, 64], strides = [1, 1]} : vector<8x256xf32> to vector<8x64xf32>
      %146 = arith.mulf %143, %104 : vector<8x64xf32>
      %147 = arith.mulf %142, %144 : vector<8x64xf32>
      %148 = arith.addf %146, %147 : vector<8x64xf32>
      %149 = math.tanh %148 : vector<8x64xf32>
      %150 = arith.mulf %145, %149 : vector<8x64xf32>
      scf.yield %130, %128, %150, %148 : vector<8x64xf32>, vector<8x64xf32>, vector<8x64xf32>, vector<8x64xf32>
    }
    %c8_i32_32 = arith.constant 8 : i32
    %c0_33 = arith.constant 0 : index
    %c0_34 = arith.constant 0 : index
    %45 = vector.load %arg12[%c0_33, %c0_34] : memref<64x128xf32, #tpu.memory_space<vmem>>, vector<64x128xf32>
    %cst_35 = arith.constant dense<0.000000e+00> : vector<8x128xf32>
    %46 = tpu.matmul %44#2, %45, %cst_35 {dimension_numbers = #tpu.dot_dimension_numbers<[1], [0], [0], [1], [0, 0, 1, 1], [], []>} : vector<8x64xf32>, vector<64x128xf32>, vector<8x128xf32> -> vector<8x128xf32>
    %c0_36 = arith.constant 0 : index
    %c0_37 = arith.constant 0 : index
    %47 = vector.load %arg13[%c0_36, %c0_37] : memref<1x128xf32, #tpu.memory_space<vmem>>, vector<1x128xf32>
    %48 = vector.broadcast %47 : vector<1x128xf32> to vector<8x128xf32>
    %49 = arith.addf %46, %48 : vector<8x128xf32>
    %cst_38 = arith.constant dense<0xFF800000> : vector<8xf32>
    %50 = vector.multi_reduction <maximumf>, %49, %cst_38 [1] : vector<8x128xf32> to vector<8xf32>
    %51 = vector.shape_cast %50 : vector<8xf32> to vector<8x1xf32>
    %52 = vector.broadcast %51 : vector<8x1xf32> to vector<8x128xf32>
    %53 = arith.subf %49, %52 : vector<8x128xf32>
    %54 = math.exp %53 : vector<8x128xf32>
    %cst_39 = arith.constant dense<0.000000e+00> : vector<8xf32>
    %55 = vector.multi_reduction <add>, %54, %cst_39 [1] : vector<8x128xf32> to vector<8xf32>
    %56 = vector.shape_cast %55 : vector<8xf32> to vector<8x1xf32>
    %57 = math.log %56 : vector<8x1xf32>
    %58 = arith.addf %51, %57 : vector<8x1xf32>
    %59 = vector.broadcast %58 : vector<8x1xf32> to vector<8x128xf32>
    %60 = arith.subf %49, %59 : vector<8x128xf32>
    %c0_40 = arith.constant 0 : index
    %c0_41 = arith.constant 0 : index
    %61 = vector.load %arg14[%c0_40, %c0_41] : memref<8x128xf32, #tpu.memory_space<vmem>>, vector<8x128xf32>
    tpu.vector_store %arg14[%c0_40, %c0_41], %60 {strides = array<i32>} : memref<8x128xf32, #tpu.memory_space<vmem>>, vector<8x128xf32>,
    return
  }
}

</mosaic_0001>

<bundles_post_ra>
// kernel: tpu_custom_call.1
= control target key start
LH: loop header
LB: loop body
LE: loop exit
PB: predicated region body
PF: predicated region fallthrough
CT: control target
= control target key end

     0   :  { %19 = vsyncpa [#allocation4], 0  ;;  %s2604_s0 = inlined_call_operand.vmem [shape: bf16[128,4], index: 0, kind: input, shape index: {}]   ;;  %s2605_s1 = inlined_call_operand.vmem [shape: bf16[4,128], index: 1, kind: input, shape index: {}]   ;;  %s2606_s2 = inlined_call_operand.hbm [shape: f32[1,128], index: 2, kind: input, shape index: {}]   ;;  %s2607_s3 = inlined_call_operand.vmem [shape: bf16[128,64], index: 3, kind: input, shape index: {}]   ;;  %s2608_s4 = inlined_call_operand.hbm [shape: f32[1,64], index: 4, kind: input, shape index: {}]   ;;  %s2609_s5 = inlined_call_operand.vmem [shape: bf16[64,32], index: 5, kind: input, shape index: {}]   ;;  %s2610_s6 = inlined_call_operand.hbm [shape: f32[1,32], index: 6, kind: input, shape index: {}]   ;;  %s2611_s7 = inlined_call_operand.vmem [shape: bf16[32,256], index: 7, kind: input, shape index: {}]   ;;  %s2612_s8 = inlined_call_operand.vmem [shape: f32[1,256], index: 8, kind: input, shape index: {}]   ;;  %s2613_s9 = inlined_call_operand.vmem [shape: bf16[64,256], index: 9, kind: input, shape index: {}]   ;;  %s2614_s10 = inlined_call_operand.vmem [shape: bf16[128,256], index: 10, kind: input, shape index: {}]   ;;  %s2615_s11 = inlined_call_operand.hbm [shape: f32[1,256], index: 11, kind: input, shape index: {}]   ;;  %s2616_s12 = inlined_call_operand.hbm [shape: f32[64,128], index: 12, kind: input, shape index: {}]   ;;  %s2617_s13 = inlined_call_operand.vmem [shape: f32[1,128], index: 13, kind: input, shape index: {}]   ;;  %s2618_s14 = inlined_call_operand.hbm [shape: f32[8,128], index: 14, kind: output, shape index: {}]  }
   0x1   :  { %20 = vsyncpa [#allocation7], 0 }
   0x2   :  { %21 = vsyncpa [#allocation10], 0 }
   0x3   :  { %22 = vsyncpa [#allocation5], 0  ;;  %s2080_s29 = smov [#allocation6]   ;;  %s2081_s15 = smov [#allocation9]  }
   0x4   :  { %s45_s30 = sshll.u32 %s2080_s29, 4  ;;  %s75_s16 = sshll.u32 %s2081_s15, 4  ;;  %s46_s30 = int_to_ptr.vmem [resolvable:$true] %s45_s30  ;;  %s76_s16 = int_to_ptr.vmem [resolvable:$true] %s75_s16 }
   0x5   :  { %s1920_s17 = scalar_lea.vmem %s46_s30, 16  ;;  %s1924_s18 = scalar_lea.vmem %s46_s30, 32 }
   0x6   :  { %p1921_p0 = scmp.ne.s32.totalorder %s46_s30, %s1920_s17  ;;  %p1925_p1 = scmp.lt.s32.totalorder %s46_s30, %s46_s30 }
   0x7   :  { %p1926_p2 = scmp.lt.s32.totalorder %s1924_s18, %s1920_s17 }
   0x9   :  { %p1927_p3 = por %p1926_p2, %p1925_p1 }
   0xb   :  { %p1928_p4 = pnand %p1927_p3, %p1921_p0 }
   0xd   :  { %1931 = shalt.err (!%p1928_p4)
}
   0xe   :  { %48 = dma.hbm_to_vmem [thread:$0]  %s2608_s4, 16, %s46_s30, [#allocation7]  }
   0xf   :  { %s1940_s21 = scalar_lea.vmem %s76_s16, 32  ;;  %p1945_p6 = scmp.lt.s32.totalorder %s76_s16, %s76_s16 }
  0x10   :  { %p1941_p5 = scmp.ne.s32.totalorder %s76_s16, %s1940_s21  ;;  %p1946_p7 = scmp.lt.s32.totalorder %s1940_s21, %s1940_s21 }
  0x12   :  { %p1947_p8 = por %p1946_p7, %p1945_p6 }
  0x14   :  { %p1948_p9 = pnand %p1947_p8, %p1941_p5 }
  0x16   :  { %1951 = shalt.err (!%p1948_p9)
}
  0x17   :  { %78 = dma.hbm_to_vmem [thread:$0]  %s2615_s11, 32, %s76_s16, [#allocation10]  }
  0x18   :  { %s2082_s24 = smov [#allocation3]   ;;  %s2083_s26 = smov [#allocation8]  }
  0x19   :  { %s33_s25 = sshll.u32 %s2082_s24, 4  ;;  %s57_s27 = sshll.u32 %s2083_s26, 4  ;;  %s34_s25 = int_to_ptr.vmem [resolvable:$true] %s33_s25  ;;  %s58_s27 = int_to_ptr.vmem [resolvable:$true] %s57_s27 }
  0x1a   :  { %s1960_s28 = scalar_lea.vmem %s34_s25, 16  ;;  %s1964_s4 = scalar_lea.vmem %s34_s25, 32 }
  0x1b   :  { %p1961_p10 = scmp.ne.s32.totalorder %s34_s25, %s1960_s28  ;;  %p1965_p11 = scmp.lt.s32.totalorder %s34_s25, %s34_s25 }
  0x1c   :  { %p1966_p12 = scmp.lt.s32.totalorder %s1964_s4, %s1960_s28 }
  0x1e   :  { %p1967_p13 = por %p1966_p12, %p1965_p11 }
  0x20   :  { %p1968_p0 = pnand %p1967_p13, %p1961_p10 }
  0x22   :  { %1971 = shalt.err (!%p1968_p0)
}
  0x23   :  { %36 = dma.hbm_to_vmem [thread:$0]  %s2606_s2, 16, %s34_s25, [#allocation4]  }
  0x24   :  { %s1980_s15 = scalar_lea.vmem %s58_s27, 16  ;;  %s1984_s11 = scalar_lea.vmem %s58_s27, 32 }
  0x25   :  { %p1981_p1 = scmp.ne.s32.totalorder %s58_s27, %s1980_s15  ;;  %p1985_p2 = scmp.lt.s32.totalorder %s58_s27, %s58_s27 }
  0x26   :  { %p1986_p3 = scmp.lt.s32.totalorder %s1984_s11, %s1980_s15 }
  0x28   :  { %p1987_p4 = por %p1986_p3, %p1985_p2 }
  0x2a   :  { %p1988_p5 = pnand %p1987_p4, %p1981_p1 }
  0x2c   :  { %1991 = shalt.err (!%p1988_p5)
}
  0x2d   :  { %60 = dma.hbm_to_vmem [thread:$0]  %s2610_s6, 16, %s58_s27, [#allocation7]  }
  0x2e   :  { %s2084_s18 = smov [#allocation11]  }
  0x2f   :  { %s84_s19 = sshll.u32 %s2084_s18, 4  ;;  %s85_s19 = int_to_ptr.vmem [resolvable:$true] %s84_s19 }
  0x30   :  { %s2000_s20 = scalar_lea.vmem %s85_s19, 1024  ;;  %p2005_p7 = scmp.lt.s32.totalorder %s85_s19, %s85_s19 }
  0x31   :  { %p2001_p6 = scmp.ne.s32.totalorder %s85_s19, %s2000_s20  ;;  %p2006_p8 = scmp.lt.s32.totalorder %s2000_s20, %s2000_s20 }
  0x33   :  { %p2007_p9 = por %p2006_p8, %p2005_p7 }
  0x35   :  { %p2008_p10 = pnand %p2007_p9, %p2001_p6 }
  0x37   :  { %2011 = shalt.err (!%p2008_p10)
}
  0x38   :  { %s2085_s2 = smov 128   ;;  %s2086_s21 = smov 8  }
  0x39   :  { %90 = dma.hbm_to_vmem [thread:$0]  %s2616_s12, 1024, %s85_s19, [#allocation10], %s2085_s2, %s2085_s2, %s2086_s21  }
  0x3a   :  { %2052 = dma.done.wait [#allocation4], 16  }
  0x3b   :  { %2053 = vsyncadd [#allocation4], 4294967280 }
  0x3c   :  { %2054 = dma.done.wait [#allocation7], 32  }
  0x3d   :  { %2055 = vsyncadd [#allocation7], 4294967264 }
  0x3e   :  { %2056 = dma.done.wait [#allocation10], 1056  }
  0x3f   :  { %2057 = vsyncadd [#allocation10], 4294966240  ;;  %v2187_v0 = vld [vmem:[%s2613_s9] sm:$0xff]  ;;  %v2192_v1 = vld [vmem:[%s2613_s9 + $0x8] sm:$0xff]  ;;  %vm198_vm0 = vcmask 1041408   ;;  %vm173_vm1 = vcmask 31744  }
  0x40   :  { %v2197_v2 = vld [vmem:[%s2613_s9 + $0x10] sm:$0xff]  ;;  %v2202_v3 = vld [vmem:[%s2613_s9 + $0x18] sm:$0xff]  ;;  %v2207_v4 = vld [vmem:[%s2613_s9 + $0x20] sm:$0xff]  ;;  %vm554_vm2 = vcmask 523264   ;;  %vm736_vm3 = vcmask 261120  }
  0x41   :  { %v2212_v5 = vld [vmem:[%s2613_s9 + $0x28] sm:$0xff]  ;;  %v2217_v6 = vld [vmem:[%s2613_s9 + $0x30] sm:$0xff]  ;;  %v2222_v7 = vld [vmem:[%s2613_s9 + $0x38] sm:$0xff] }
  0x42   :  { %v2227_v8 = vld [vmem:[%s2614_s10] sm:$0xff]  ;;  %v2232_v9 = vld [vmem:[%s2614_s10 + $0x8] sm:$0xff]  ;;  %v2237_v10 = vld [vmem:[%s2614_s10 + $0x10] sm:$0xff] }
  0x43   :  { %v2242_v11 = vld [vmem:[%s2614_s10 + $0x18] sm:$0xff]  ;;  %v2247_v12 = vld [vmem:[%s2614_s10 + $0x20] sm:$0xff]  ;;  %v2252_v13 = vld [vmem:[%s2614_s10 + $0x28] sm:$0xff] }
  0x44   :  { %v2257_v14 = vld [vmem:[%s2614_s10 + $0x30] sm:$0xff]  ;;  %v2262_v15 = vld [vmem:[%s2614_s10 + $0x38] sm:$0xff]  ;;  %v2267_v16 = vld [vmem:[%s2614_s10 + $0x40] sm:$0xff] }
  0x45   :  { %v2272_v17 = vld [vmem:[%s2614_s10 + $0x48] sm:$0xff]  ;;  %v2277_v18 = vld [vmem:[%s2614_s10 + $0x50] sm:$0xff]  ;;  %v2282_v19 = vld [vmem:[%s2614_s10 + $0x58] sm:$0xff] }
  0x46   :  { %v2287_v20 = vld [vmem:[%s2614_s10 + $0x60] sm:$0xff]  ;;  %v2292_v21 = vld [vmem:[%s2614_s10 + $0x68] sm:$0xff]  ;;  %v2297_v22 = vld [vmem:[%s2614_s10 + $0x70] sm:$0xff] }
  0x47   :  { %v2302_v23 = vld [vmem:[%s2614_s10 + $0x78] sm:$0xff]  ;;  %v125_v24 = vld [vmem:[%s2605_s1] sm:$0x3]  ;;  %v1835_v27 = vld [vmem:[%s2604_s0 + $0x8] sm:$0xff]  }
  0x48   :  { %1779 = vmatprep.subr.msk.bf16.mxu0 %vm198_vm0, %v125_v24  ;;  %v200_v25 = vsel %vm198_vm0, %v125_v24, 0  ;;  %v1834_v26 = vld [vmem:[%s2604_s0] sm:$0xff]   ;;  %v1836_v28 = vld [vmem:[%s2604_s0 + $0x10] sm:$0xff]   ;;  %v1837_v29 = vld [vmem:[%s2604_s0 + $0x18] sm:$0xff]  }
  0x49   :  { %1679 = vmatpush3.bf16.msra.mxu0 %v200_v25  ;;  %1680 = vmatprep.mubr.msk.bf16.mxu0 %vm173_vm1, %v1834_v26  ;;  %v1838_v30 = vld [vmem:[%s2604_s0 + $0x20] sm:$0xff]   ;;  %v1842_v31 = vld [vmem:[%s2607_s3 + $0x38] sm:$0xff]   ;;  %v1843_v32 = vld [vmem:[%s2607_s3 + $0x30] sm:$0xff]  }
  0x4a   :  { %1696 = vmatprep.subr.bf16.mxu0 %v1842_v31  ;;  %v1844_v33 = vld [vmem:[%s2607_s3 + $0x28] sm:$0xff]   ;;  %v1845_v35 = vld [vmem:[%s2607_s3 + $0x20] sm:$0xff]   ;;  %v1840_v36 = vld [vmem:[%s2604_s0 + $0x30] sm:$0xff]  }
  0x4b   :  { %v1839_v34 = vld [vmem:[%s2604_s0 + $0x28] sm:$0xff]   ;;  %v1846_v37 = vld [vmem:[%s2607_s3 + $0x18] sm:$0xff]   ;;  %v1847_v39 = vld [vmem:[%s2607_s3 + $0x10] sm:$0xff]  }
  0x4c   :  { %1681 = vmatmul.mubr.msk.bf16.vlgmr.msra.gmra.mxu0 %vm173_vm1, %v1835_v27  ;;  %v1841_v38 = vld [vmem:[%s2604_s0 + $0x38] sm:$0xff]   ;;  %v1848_v40 = vld [vmem:[%s2607_s3 + $0x8] sm:$0xff]   ;;  %v1849_v41 = vld [vmem:[%s2607_s3] sm:$0xff]  }
  0x4d   :  { %1684 = vmatprep.mubr.msk.bf16.mxu0 %vm173_vm1, %v1836_v28  ;;  %1697 = vmatpush3.bf16.msra.mxu0 %v1842_v31  ;;  %v1850_v42 = vld [vmem:[%s2609_s5 + $0x18] sm:$0xff]   ;;  %v1851_v43 = vld [vmem:[%s2609_s5 + $0x10] sm:$0xff]   ;;  %v1852_v44 = vld [vmem:[%s2609_s5 + $0x8] sm:$0xff]  }
  0x4e   :  { %1698 = vmatprep.subr.bf16.mxu0 %v1843_v32  ;;  %1771 = vmatprep.subr.bf16.mxu1 %v1850_v42  ;;  %v1533_v47 = vld [vmem:[#allocation3] ss:$0 sm:$0xff] }
  0x4f   :  { %1775 = vmatpush3.bf16.msra.mxu1 %v1850_v42 }
  0x50   :  { %1772 = vmatprep.subr.bf16.mxu1 %v1851_v43 }
  0x51   :  { %1699 = vmatpush3.bf16.msra.mxu0 %v1843_v32 }
  0x52   :  { %1700 = vmatprep.subr.bf16.mxu0 %v1844_v33 }
  0x53   :  { %1776 = vmatpush3.bf16.msra.mxu1 %v1851_v43 }
  0x54   :  { %1685 = vmatmul.mubr.msk.bf16.gmra.mxu0 %vm173_vm1, %v1837_v29  ;;  %1773 = vmatprep.subr.bf16.mxu1 %v1852_v44 }
  0x55   :  { %1688 = vmatprep.mubr.msk.bf16.mxu0 %vm173_vm1, %v1838_v30  ;;  %1701 = vmatpush3.bf16.msra.mxu0 %v1844_v33 }
  0x56   :  { %1702 = vmatprep.subr.bf16.mxu0 %v1845_v35 }
  0x57   :  { %1777 = vmatpush3.bf16.msra.mxu1 %v1852_v44 }
  0x59   :  { %1703 = vmatpush3.bf16.msra.mxu0 %v1845_v35 }
  0x5a   :  { %1704 = vmatprep.subr.bf16.mxu0 %v1846_v37 }
  0x5c   :  { %1689 = vmatmul.mubr.msk.bf16.gmra.mxu0 %vm173_vm1, %v1839_v34 }
  0x5d   :  { %1692 = vmatprep.mubr.msk.bf16.mxu0 %vm173_vm1, %v1840_v36  ;;  %1705 = vmatpush3.bf16.msra.mxu0 %v1846_v37 }
  0x5e   :  { %1706 = vmatprep.subr.bf16.mxu0 %v1847_v39 }
  0x61   :  { %1707 = vmatpush3.bf16.msra.mxu0 %v1847_v39 }
  0x62   :  { %1708 = vmatprep.subr.bf16.mxu0 %v1848_v40 }
  0x64   :  { %1693 = vmatmul.mubr.msk.bf16.gmra.mxu0 %vm173_vm1, %v1841_v38 }
  0x65   :  { %1709 = vmatpush3.bf16.msra.mxu0 %v1848_v40 }
  0x66   :  { %1710 = vmatprep.subr.bf16.mxu0 %v1849_v41 }
  0x69   :  { %1711 = vmatpush3.bf16.msra.mxu0 %v1849_v41 }
  0x6a   :  { %1728 = vmatprep.subr.bf16.mxu0 %v1850_v42 }
 0x10c   :  { %v1682_v45 = vpop.f32.mrf.mxu0 }
 0x10d   :  { %v245_v51 = vadd.f32 %v1682_v45, %v1533_v47 }
 0x10e   :  { %v236_v46 = vpop.f32.mrf.mxu0 }
 0x10f   :  { %v237_v49 = vadd.f32 %v1533_v47, %v236_v46  ;;  %v301_v58 = vmax.f32 %v245_v51, 0.0 }
 0x110   :  { %v1683_v48 = vpop.f32.mrf.mxu0 }
 0x111   :  { %v248_v50 = vadd.f32 %v1683_v48, %v1533_v47  ;;  %v299_v56 = vmax.f32 %v237_v49, 0.0 }
 0x112   :  { %v239_v52 = vpop.f32.mrf.mxu0 }
 0x113   :  { %v240_v53 = vadd.f32 %v1533_v47, %v239_v52  ;;  %v302_v54 = vmax.f32 %v248_v50, 0.0 }
 0x114   :  { %v1686_v55 = vpop.f32.mrf.mxu0 }
 0x115   :  { %v300_v57 = vmax.f32 %v240_v53, 0.0  ;;  %v261_v59 = vadd.f32 %v1686_v55, %v1533_v47  ;;  %v316_v63 = vpack.c.bf16 %v302_v54, %v301_v58 }
 0x116   :  { %v252_v60 = vpop.f32.mrf.mxu0 }
 0x117   :  { %v315_v61 = vpack.c.bf16 %v300_v57, %v299_v56  ;;  %v253_v62 = vadd.f32 %v1533_v47, %v252_v60  ;;  %v305_v26 = vmax.f32 %v261_v59, 0.0 }
 0x118   :  { %v1687_v24 = vpop.f32.mrf.mxu0 }
 0x119   :  { %v264_v25 = vadd.f32 %v1687_v24, %v1533_v47  ;;  %1712 = vmatprep.mubr.bf16.mxu0 %v315_v61  ;;  %v303_v28 = vmax.f32 %v253_v62, 0.0 }
 0x11a   :  { %v255_v27 = vpop.f32.mrf.mxu0  ;;  %1713 = vmatmul.mubr.bf16.vlgmr.msra.gmra.mxu0 %v316_v63 }
 0x11b   :  { %v306_v29 = vmax.f32 %v264_v25, 0.0  ;;  %v256_v30 = vadd.f32 %v1533_v47, %v255_v27  ;;  %1729 = vmatpush3.bf16.msra.mxu0 %v1850_v42 }
 0x11c   :  { %v1690_v31 = vpop.f32.mrf.mxu0  ;;  %1730 = vmatprep.subr.bf16.mxu0 %v1851_v43 }
 0x11d   :  { %v304_v32 = vmax.f32 %v256_v30, 0.0  ;;  %v318_v33 = vpack.c.bf16 %v306_v29, %v305_v26  ;;  %v277_v34 = vadd.f32 %v1690_v31, %v1533_v47  ;;  %v1550_v26 = vld [vmem:[#allocation6] ss:$0 sm:$0xff] }
 0x11e   :  { %v268_v35 = vpop.f32.mrf.mxu0 }
 0x11f   :  { %v317_v36 = vpack.c.bf16 %v304_v32, %v303_v28  ;;  %v269_v37 = vadd.f32 %v1533_v47, %v268_v35  ;;  %1731 = vmatpush3.bf16.msra.mxu0 %v1851_v43  ;;  %v309_v40 = vmax.f32 %v277_v34, 0.0 }
 0x120   :  { %v1691_v38 = vpop.f32.mrf.mxu0  ;;  %1732 = vmatprep.subr.bf16.mxu0 %v1852_v44 }
 0x121   :  { %v280_v39 = vadd.f32 %v1691_v38, %v1533_v47  ;;  %1716 = vmatprep.mubr.bf16.mxu0 %v317_v36  ;;  %v307_v45 = vmax.f32 %v269_v37, 0.0 }
 0x122   :  { %v271_v41 = vpop.f32.mrf.mxu0  ;;  %1717 = vmatmul.mubr.bf16.gmra.mxu0 %v318_v33 }
 0x123   :  { %v310_v46 = vmax.f32 %v280_v39, 0.0  ;;  %v272_v48 = vadd.f32 %v1533_v47, %v271_v41  ;;  %1733 = vmatpush3.bf16.msra.mxu0 %v1852_v44  ;;  %v1853_v44 = vld [vmem:[%s2609_s5] sm:$0xff]  }
 0x124   :  { %v1694_v42 = vpop.f32.mrf.mxu0  ;;  %1734 = vmatprep.subr.bf16.mxu0 %v1853_v44  ;;  %1774 = vmatprep.subr.bf16.mxu1 %v1853_v44 }
 0x125   :  { %v308_v49 = vmax.f32 %v272_v48, 0.0  ;;  %v320_v50 = vpack.c.bf16 %v310_v46, %v309_v40  ;;  %v293_v51 = vadd.f32 %v1694_v42, %v1533_v47  ;;  %1778 = vmatpush3.bf16.msra.mxu1 %v1853_v44 }
 0x126   :  { %v284_v52 = vpop.f32.mrf.mxu0 }
 0x127   :  { %v319_v53 = vpack.c.bf16 %v308_v49, %v307_v45  ;;  %v285_v54 = vadd.f32 %v1533_v47, %v284_v52  ;;  %v313_v56 = vmax.f32 %v293_v51, 0.0  ;;  %1735 = vmatpush3.bf16.msra.mxu0 %v1853_v44 }
 0x128   :  { %v1695_v55 = vpop.f32.mrf.mxu0 }
 0x129   :  { %1720 = vmatprep.mubr.bf16.mxu0 %v319_v53  ;;  %v296_v43 = vadd.f32 %v1695_v55, %v1533_v47  ;;  %v311_v58 = vmax.f32 %v285_v54, 0.0 }
 0x12a   :  { %1721 = vmatmul.mubr.bf16.gmra.mxu0 %v320_v50  ;;  %v287_v57 = vpop.f32.mrf.mxu0 }
 0x12b   :  { %v314_v59 = vmax.f32 %v296_v43, 0.0  ;;  %v288_v60 = vadd.f32 %v1533_v47, %v287_v57 }
 0x12d   :  { %v312_v61 = vmax.f32 %v288_v60, 0.0  ;;  %v322_v62 = vpack.c.bf16 %v314_v59, %v313_v56 }
 0x12f   :  { %v321_v63 = vpack.c.bf16 %v312_v61, %v311_v58 }
 0x131   :  { %1724 = vmatprep.mubr.bf16.mxu0 %v321_v63 }
 0x132   :  { %1725 = vmatmul.mubr.bf16.gmra.mxu0 %v322_v62 }
 0x1da   :  { %v1714_v24 = vpop.f32.mrf.mxu0 }
 0x1db   :  { %v437_v47 = vadd.f32 %v1714_v24, %v1550_v26 }
 0x1dc   :  { %v428_v25 = vpop.f32.mrf.mxu0 }
 0x1dd   :  { %v429_v28 = vadd.f32 %v1550_v26, %v428_v25  ;;  %v493_v36 = vmax.f32 %v437_v47, 0.0 }
 0x1de   :  { %v1715_v27 = vpop.f32.mrf.mxu0 }
 0x1df   :  { %v440_v29 = vadd.f32 %v1715_v27, %v1550_v26  ;;  %v491_v34 = vmax.f32 %v429_v28, 0.0 }
 0x1e0   :  { %v431_v30 = vpop.f32.mrf.mxu0 }
 0x1e1   :  { %v432_v31 = vadd.f32 %v1550_v26, %v431_v30  ;;  %v494_v32 = vmax.f32 %v440_v29, 0.0 }
 0x1e2   :  { %v1718_v33 = vpop.f32.mrf.mxu0 }
 0x1e3   :  { %v492_v35 = vmax.f32 %v432_v31, 0.0  ;;  %v508_v39 = vpack.c.bf16 %v494_v32, %v493_v36  ;;  %v453_v46 = vadd.f32 %v1718_v33, %v1550_v26 }
 0x1e4   :  { %v444_v37 = vpop.f32.mrf.mxu0 }
 0x1e5   :  { %v507_v38 = vpack.c.bf16 %v492_v35, %v491_v34  ;;  %v445_v41 = vadd.f32 %v1550_v26, %v444_v37  ;;  %v497_v53 = vmax.f32 %v453_v46, 0.0  ;;  %v1857_v46 = vld [vmem:[%s2611_s7] ss:$8 sps:$4 sm:$0xff]  }
 0x1e6   :  { %v1719_v40 = vpop.f32.mrf.mxu0 }
 0x1e7   :  { %v456_v45 = vadd.f32 %v1719_v40, %v1550_v26  ;;  %1736 = vmatprep.mubr.msk.bf16.mxu0 %vm554_vm2, %v507_v38  ;;  %v495_v51 = vmax.f32 %v445_v41, 0.0  ;;  %v1856_v41 = vld [vmem:[%s2611_s7 + $0x14] ss:$8 sps:$4 sm:$0xff]  }
 0x1e8   :  { %v447_v48 = vpop.f32.mrf.mxu0  ;;  %1737 = vmatmul.mubr.msk.bf16.vlgmr.msra.gmra.mxu0 %vm554_vm2, %v508_v39  ;;  %773 = vmatprep.subr.bf16.mxu1 %v1856_v41 }
 0x1e9   :  { %v448_v42 = vadd.f32 %v1550_v26, %v447_v48  ;;  %v498_v49 = vmax.f32 %v456_v45, 0.0  ;;  %v1854_v45 = vld [vmem:[%s2611_s7 + $0x10] ss:$8 sps:$4 sm:$0xff]   ;;  %v2087_v48 = vmov 0  }
 0x1ea   :  { %v1722_v50 = vpop.f32.mrf.mxu0 }
 0x1eb   :  { %v496_v52 = vmax.f32 %v448_v42, 0.0  ;;  %v469_v54 = vadd.f32 %v1722_v50, %v1550_v26  ;;  %v510_v57 = vpack.c.bf16 %v498_v49, %v497_v53  ;;  %v2396_v50 = vld [vmem:[#allocation8] ss:$0 sm:$0xff] }
 0x1ec   :  { %v460_v55 = vpop.f32.mrf.mxu0 }
 0x1ed   :  { %v509_v43 = vpack.c.bf16 %v496_v52, %v495_v51  ;;  %v461_v56 = vadd.f32 %v1550_v26, %v460_v55  ;;  %v501_v60 = vmax.f32 %v469_v54, 0.0 }
 0x1ee   :  { %v1723_v58 = vpop.f32.mrf.mxu0 }
 0x1ef   :  { %v472_v59 = vadd.f32 %v1723_v58, %v1550_v26  ;;  %1740 = vmatprep.mubr.msk.bf16.mxu0 %vm554_vm2, %v509_v43  ;;  %v499_v62 = vmax.f32 %v461_v56, 0.0 }
 0x1f0   :  { %v463_v61 = vpop.f32.mrf.mxu0  ;;  %1741 = vmatmul.mubr.msk.bf16.gmra.mxu0 %vm554_vm2, %v510_v57 }
 0x1f1   :  { %v502_v63 = vmax.f32 %v472_v59, 0.0  ;;  %v464_v44 = vadd.f32 %v1550_v26, %v463_v61 }
 0x1f2   :  { %v1726_v24 = vpop.f32.mrf.mxu0 }
 0x1f3   :  { %v500_v25 = vmax.f32 %v464_v44, 0.0  ;;  %v512_v27 = vpack.c.bf16 %v502_v63, %v501_v60  ;;  %v485_v28 = vadd.f32 %v1726_v24, %v1550_v26 }
 0x1f4   :  { %v476_v29 = vpop.f32.mrf.mxu0 }
 0x1f5   :  { %v511_v47 = vpack.c.bf16 %v500_v25, %v499_v62  ;;  %v477_v30 = vadd.f32 %v1550_v26, %v476_v29  ;;  %v505_v33 = vmax.f32 %v485_v28, 0.0 }
 0x1f6   :  { %v1727_v31 = vpop.f32.mrf.mxu0 }
 0x1f7   :  { %1744 = vmatprep.mubr.msk.bf16.mxu0 %vm554_vm2, %v511_v47  ;;  %v488_v32 = vadd.f32 %v1727_v31, %v1550_v26  ;;  %v503_v35 = vmax.f32 %v477_v30, 0.0 }
 0x1f8   :  { %1745 = vmatmul.mubr.msk.bf16.gmra.mxu0 %vm554_vm2, %v512_v27  ;;  %v479_v34 = vpop.f32.mrf.mxu0 }
 0x1f9   :  { %v506_v36 = vmax.f32 %v488_v32, 0.0  ;;  %v480_v37 = vadd.f32 %v1550_v26, %v479_v34  ;;  %v1859_v26 = vld [vmem:[%s2611_s7 + $0x4] ss:$8 sps:$4 sm:$0xff]  }
 0x1fb   :  { %v504_v38 = vmax.f32 %v480_v37, 0.0  ;;  %v514_v39 = vpack.c.bf16 %v506_v36, %v505_v33 }
 0x1fd   :  { %v513_v40 = vpack.c.bf16 %v504_v38, %v503_v35 }
 0x1ff   :  { %1748 = vmatprep.mubr.msk.bf16.mxu1 %vm554_vm2, %v513_v40 }
 0x200   :  { %1749 = vmatmul.mubr.msk.bf16.vlgmr.msra.gmra.mxu1 %vm554_vm2, %v514_v39 }
 0x201   :  { %774 = vmatpush1.bf16.msra.mxu1 %v1854_v45  ;;  %793 = vmatprep.mubr.bf16.mxu1 %v2087_v48 }
 0x202   :  { %775 = vmatprep.subr.bf16.mxu1 %v1859_v26 }
 0x205   :  { %776 = vmatpush1.bf16.msra.mxu1 %v1857_v46 }
 0x2a8   :  { %v1738_v42 = vpop.f32.mrf.mxu0 }
 0x2a9   :  { %v622_v61 = vadd.f32 %v1738_v42, %v2396_v50 }
 0x2aa   :  { %v613_v49 = vpop.f32.mrf.mxu0 }
 0x2ab   :  { %v614_v52 = vadd.f32 %v2396_v50, %v613_v49  ;;  %v678_v44 = vmax.f32 %v622_v61, 0.0 }
 0x2ac   :  { %v1739_v51 = vpop.f32.mrf.mxu0 }
 0x2ad   :  { %v676_v43 = vmax.f32 %v614_v52, 0.0  ;;  %v625_v58 = vadd.f32 %v1739_v51, %v2396_v50 }
 0x2ae   :  { %v616_v53 = vpop.f32.mrf.mxu0 }
 0x2af   :  { %v617_v54 = vadd.f32 %v2396_v50, %v616_v53  ;;  %v679_v62 = vmax.f32 %v625_v58, 0.0 }
 0x2b0   :  { %v1742_v55 = vpop.f32.mrf.mxu0 }
 0x2b1   :  { %v677_v56 = vmax.f32 %v617_v54, 0.0  ;;  %v693_v24 = vpack.c.bf16 %v679_v62, %v678_v44  ;;  %v638_v34 = vadd.f32 %v1742_v55, %v2396_v50 }
 0x2b2   :  { %v629_v57 = vpop.f32.mrf.mxu0 }
 0x2b3   :  { %v692_v59 = vpack.c.bf16 %v677_v56, %v676_v43  ;;  %v630_v28 = vadd.f32 %v2396_v50, %v629_v57  ;;  %v682_v37 = vmax.f32 %v638_v34, 0.0 }
 0x2b4   :  { %v1743_v60 = vpop.f32.mrf.mxu0 }
 0x2b5   :  { %1576 = vmatmul.mubr.msk.bf16.vlgmr.msra.gmra.mxu1 %vm736_vm3, %v692_v59  ;;  %v680_v30 = vmax.f32 %v630_v28, 0.0  ;;  %v641_v31 = vadd.f32 %v1743_v60, %v2396_v50 }
 0x2b6   :  { %803 = vmatprep.mubr.bf16.mxu1 %v2087_v48  ;;  %v632_v63 = vpop.f32.mrf.mxu0 }
 0x2b7   :  { %v633_v25 = vadd.f32 %v2396_v50, %v632_v63  ;;  %v683_v35 = vmax.f32 %v641_v31, 0.0 }
 0x2b8   :  { %v1746_v27 = vpop.f32.mrf.mxu0 }
 0x2b9   :  { %v681_v29 = vmax.f32 %v633_v25, 0.0  ;;  %v695_v38 = vpack.c.bf16 %v683_v35, %v682_v37  ;;  %v654_v52 = vadd.f32 %v1746_v27, %v2396_v50  ;;  %v706_v25 = vlaneseq }
 0x2ba   :  { %v645_v47 = vpop.f32.mrf.mxu0 }
 0x2bb   :  { %v694_v32 = vpack.c.bf16 %v681_v29, %v680_v30  ;;  %v646_v41 = vadd.f32 %v2396_v50, %v645_v47  ;;  %v686_v55 = vmax.f32 %v654_v52, 0.0  ;;  %v707_v27 = vshrl.u32 %v706_v25, 7  ;;  %v930_v29 = vld [vmem:[#allocation9] sm:$0x3] }
 0x2bc   :  { %v1747_v33 = vpop.f32.mrf.mxu0 }
 0x2bd   :  { %1577 = vmatmul.mubr.msk.bf16.gmra.mxu1 %vm736_vm3, %v693_v24  ;;  %v684_v46 = vmax.f32 %v646_v41, 0.0  ;;  %v657_v42 = vadd.f32 %v1747_v33, %v2396_v50  ;;  %v708_v28 = vsub.s32 0, %v707_v27  ;;  %v712_v47 = vsub.s32 1, %v707_v27 }
 0x2be   :  { %813 = vmatprep.mubr.bf16.mxu1 %v2087_v48  ;;  %v648_v36 = vpop.f32.mrf.mxu0 }
 0x2bf   :  { %v649_v39 = vadd.f32 %v2396_v50, %v648_v36  ;;  %v687_v53 = vmax.f32 %v657_v42, 0.0  ;;  %v2429_v30 = vrot.slane %v930_v29, %v708_v28  ;;  %v2431_v31 = vrot.slane %v930_v29, %v712_v47 }
 0x2c0   :  { %v1750_v40 = vpop.f32.mrf.mxu1 }
 0x2c1   :  { %v685_v45 = vmax.f32 %v649_v39, 0.0  ;;  %v697_v43 = vpack.c.bf16 %v687_v53, %v686_v55  ;;  %v670_v60 = vadd.f32 %v1750_v40, %v2396_v50 }
 0x2c2   :  { %v661_v26 = vpop.f32.mrf.mxu1 }
 0x2c3   :  { %v696_v49 = vpack.c.bf16 %v685_v45, %v684_v46  ;;  %v662_v56 = vadd.f32 %v2396_v50, %v661_v26  ;;  %v690_v63 = vmax.f32 %v670_v60, 0.0 }
 0x2c4   :  { %v1751_v51 = vpop.f32.mrf.mxu1 }
 0x2c5   :  { %1578 = vmatmul.mubr.msk.bf16.gmra.mxu1 %vm736_vm3, %v694_v32  ;;  %v688_v58 = vmax.f32 %v662_v56, 0.0  ;;  %v673_v61 = vadd.f32 %v1751_v51, %v2396_v50 }
 0x2c6   :  { %823 = vmatprep.mubr.bf16.mxu1 %v2087_v48  ;;  %v664_v54 = vpop.f32.mrf.mxu1 }
 0x2c7   :  { %v665_v57 = vadd.f32 %v2396_v50, %v664_v54  ;;  %v691_v44 = vmax.f32 %v673_v61, 0.0  ;;  %v943_v50 = vand.u32 127, %v706_v25 }
 0x2c9   :  { %v689_v59 = vmax.f32 %v665_v57, 0.0  ;;  %v699_v24 = vpack.c.bf16 %v691_v44, %v690_v63  ;;  %v2433_v32 = vadd.s32 128, %v943_v50 }
 0x2cb   :  { %v698_v62 = vpack.c.bf16 %v689_v59, %v688_v58  ;;  %vm948_vm4 = vcmp.lt.s32.totalorder %v2433_v32, 192 }
 0x2cd   :  { %1579 = vmatmul.mubr.msk.bf16.gmra.mxu1 %vm736_vm3, %v695_v38 }
 0x2ce   :  { %833 = vmatprep.mubr.bf16.mxu1 %v2087_v48 }
 0x2d5   :  { %1580 = vmatmul.mubr.msk.bf16.gmra.mxu1 %vm736_vm3, %v696_v49 }
 0x2d6   :  { %843 = vmatprep.mubr.bf16.mxu1 %v2087_v48 }
 0x2dd   :  { %1581 = vmatmul.mubr.msk.bf16.gmra.mxu1 %vm736_vm3, %v697_v43 }
 0x2de   :  { %853 = vmatprep.mubr.bf16.mxu1 %v2087_v48 }
 0x2e5   :  { %1582 = vmatmul.mubr.msk.bf16.gmra.mxu1 %vm736_vm3, %v698_v62 }
 0x2e6   :  { %863 = vmatprep.mubr.bf16.mxu1 %v2087_v48  ;;  %v704_v48 = vld [vmem:[%s2612_s8] sm:$0x3]  ;;  %s2483_s8 = smov 0  }
 0x2e7   :  { %v2439_v33 = vrot.slane %v704_v48, %v708_v28  ;;  %v2441_v34 = vrot.slane %v704_v48, %v712_v47 }
 0x2ed   :  { %1583 = vmatmul.mubr.msk.bf16.gmra.mxu1 %vm736_vm3, %v699_v24 }
 0x375   :  { %v795_v35 = vpop.f32.mrf.mxu1 }
 0x376   :  { %v796_v36 = vadd.f32 %v795_v35, %v2439_v33 }
 0x377   :  { %v797_v37 = vpop.f32.mrf.mxu1 }
 0x378   :  { %874 = vst [vmem:[#allocation2] sm:$0xff] %v796_v36  ;;  %v798_v38 = vadd.f32 %v797_v37, %v2441_v34 }
 0x379   :  { %v799_v39 = vpop.f32.mrf.mxu1 }
 0x37a   :  { %875 = vst [vmem:[#allocation2 + $0x8] sm:$0xff] %v798_v38  ;;  %v800_v40 = vadd.f32 %v799_v39, %v2439_v33 }
 0x37b   :  { %v801_v41 = vpop.f32.mrf.mxu1 }
 0x37c   :  { %876 = vst [vmem:[#allocation2 + $0x10] sm:$0xff] %v800_v40  ;;  %v802_v45 = vadd.f32 %v801_v41, %v2441_v34 }
 0x37d   :  { %v805_v26 = vpop.f32.mrf.mxu1 }
 0x37e   :  { %877 = vst [vmem:[#allocation2 + $0x18] sm:$0xff] %v802_v45  ;;  %v806_v46 = vadd.f32 %v805_v26, %v2439_v33 }
 0x37f   :  { %v807_v42 = vpop.f32.mrf.mxu1 }
 0x380   :  { %878 = vst [vmem:[#allocation2 + $0x20] sm:$0xff] %v806_v46  ;;  %v808_v49 = vadd.f32 %v807_v42, %v2441_v34 }
 0x381   :  { %v809_v51 = vpop.f32.mrf.mxu1 }
 0x382   :  { %879 = vst [vmem:[#allocation2 + $0x28] sm:$0xff] %v808_v49  ;;  %v810_v52 = vadd.f32 %v809_v51, %v2439_v33 }
 0x383   :  { %v811_v53 = vpop.f32.mrf.mxu1 }
 0x384   :  { %880 = vst [vmem:[#allocation2 + $0x30] sm:$0xff] %v810_v52  ;;  %v812_v54 = vadd.f32 %v811_v53, %v2441_v34 }
 0x385   :  { %v815_v55 = vpop.f32.mrf.mxu1 }
 0x386   :  { %881 = vst [vmem:[#allocation2 + $0x38] sm:$0xff] %v812_v54  ;;  %v816_v43 = vadd.f32 %v815_v55, %v2439_v33 }
 0x387   :  { %v817_v56 = vpop.f32.mrf.mxu1 }
 0x388   :  { %882 = vst [vmem:[#allocation2 + $0x40] sm:$0xff] %v816_v43  ;;  %v818_v57 = vadd.f32 %v817_v56, %v2441_v34 }
 0x389   :  { %v819_v58 = vpop.f32.mrf.mxu1 }
 0x38a   :  { %883 = vst [vmem:[#allocation2 + $0x48] sm:$0xff] %v818_v57  ;;  %v820_v59 = vadd.f32 %v819_v58, %v2439_v33 }
 0x38b   :  { %v821_v60 = vpop.f32.mrf.mxu1 }
 0x38c   :  { %884 = vst [vmem:[#allocation2 + $0x50] sm:$0xff] %v820_v59  ;;  %v822_v61 = vadd.f32 %v821_v60, %v2441_v34 }
 0x38d   :  { %v825_v62 = vpop.f32.mrf.mxu1 }
 0x38e   :  { %885 = vst [vmem:[#allocation2 + $0x58] sm:$0xff] %v822_v61  ;;  %v826_v63 = vadd.f32 %v825_v62, %v2439_v33 }
 0x38f   :  { %v827_v44 = vpop.f32.mrf.mxu1 }
 0x390   :  { %886 = vst [vmem:[#allocation2 + $0x60] sm:$0xff] %v826_v63  ;;  %v828_v24 = vadd.f32 %v827_v44, %v2441_v34 }
 0x391   :  { %v829_v25 = vpop.f32.mrf.mxu1 }
 0x392   :  { %887 = vst [vmem:[#allocation2 + $0x68] sm:$0xff] %v828_v24  ;;  %v830_v27 = vadd.f32 %v829_v25, %v2439_v33 }
 0x393   :  { %v831_v28 = vpop.f32.mrf.mxu1 }
 0x394   :  { %888 = vst [vmem:[#allocation2 + $0x70] sm:$0xff] %v830_v27  ;;  %v832_v29 = vadd.f32 %v831_v28, %v2441_v34  ;;  %v2475_v27 = vmov 0.0   ;;  %v2477_v28 = vmov 0.0  }
 0x395   :  { %v835_v47 = vpop.f32.mrf.mxu1 }
 0x396   :  { %889 = vst [vmem:[#allocation2 + $0x78] sm:$0xff] %v832_v29  ;;  %v836_v50 = vadd.f32 %v835_v47, %v2439_v33  ;;  %v2479_v29 = vmov 0.0   ;;  %v2481_v47 = vmov 0.0  }
 0x397   :  { %v837_v48 = vpop.f32.mrf.mxu1 }
 0x398   :  { %890 = vst [vmem:[#allocation2 + $0x80] sm:$0xff] %v836_v50  ;;  %v838_v35 = vadd.f32 %v837_v48, %v2441_v34 }
 0x399   :  { %v839_v36 = vpop.f32.mrf.mxu1 }
 0x39a   :  { %891 = vst [vmem:[#allocation2 + $0x88] sm:$0xff] %v838_v35  ;;  %v840_v37 = vadd.f32 %v839_v36, %v2439_v33 }
 0x39b   :  { %v841_v38 = vpop.f32.mrf.mxu1 }
 0x39c   :  { %892 = vst [vmem:[#allocation2 + $0x90] sm:$0xff] %v840_v37  ;;  %v842_v39 = vadd.f32 %v841_v38, %v2441_v34 }
 0x39d   :  { %v845_v40 = vpop.f32.mrf.mxu1 }
 0x39e   :  { %893 = vst [vmem:[#allocation2 + $0x98] sm:$0xff] %v842_v39  ;;  %v846_v41 = vadd.f32 %v845_v40, %v2439_v33 }
 0x39f   :  { %v847_v45 = vpop.f32.mrf.mxu1 }
 0x3a0   :  { %894 = vst [vmem:[#allocation2 + $0xa0] sm:$0xff] %v846_v41  ;;  %v848_v26 = vadd.f32 %v847_v45, %v2441_v34 }
 0x3a1   :  { %v849_v46 = vpop.f32.mrf.mxu1 }
 0x3a2   :  { %895 = vst [vmem:[#allocation2 + $0xa8] sm:$0xff] %v848_v26  ;;  %v850_v42 = vadd.f32 %v849_v46, %v2439_v33 }
 0x3a3   :  { %v851_v49 = vpop.f32.mrf.mxu1 }
 0x3a4   :  { %896 = vst [vmem:[#allocation2 + $0xb0] sm:$0xff] %v850_v42  ;;  %v852_v51 = vadd.f32 %v851_v49, %v2441_v34 }
 0x3a5   :  { %v855_v52 = vpop.f32.mrf.mxu1 }
 0x3a6   :  { %897 = vst [vmem:[#allocation2 + $0xb8] sm:$0xff] %v852_v51  ;;  %v856_v53 = vadd.f32 %v855_v52, %v2439_v33 }
 0x3a7   :  { %v857_v54 = vpop.f32.mrf.mxu1 }
 0x3a8   :  { %898 = vst [vmem:[#allocation2 + $0xc0] sm:$0xff] %v856_v53  ;;  %v858_v55 = vadd.f32 %v857_v54, %v2441_v34 }
 0x3a9   :  { %v859_v43 = vpop.f32.mrf.mxu1 }
 0x3aa   :  { %899 = vst [vmem:[#allocation2 + $0xc8] sm:$0xff] %v858_v55  ;;  %v860_v56 = vadd.f32 %v859_v43, %v2439_v33 }
 0x3ab   :  { %v861_v57 = vpop.f32.mrf.mxu1 }
 0x3ac   :  { %900 = vst [vmem:[#allocation2 + $0xd0] sm:$0xff] %v860_v56  ;;  %v862_v58 = vadd.f32 %v861_v57, %v2441_v34 }
 0x3ad   :  { %v865_v59 = vpop.f32.mrf.mxu1 }
 0x3ae   :  { %901 = vst [vmem:[#allocation2 + $0xd8] sm:$0xff] %v862_v58  ;;  %v866_v60 = vadd.f32 %v865_v59, %v2439_v33 }
 0x3af   :  { %v867_v61 = vpop.f32.mrf.mxu1 }
 0x3b0   :  { %902 = vst [vmem:[#allocation2 + $0xe0] sm:$0xff] %v866_v60  ;;  %v868_v62 = vadd.f32 %v867_v61, %v2441_v34 }
 0x3b1   :  { %v869_v63 = vpop.f32.mrf.mxu1 }
 0x3b2   :  { %903 = vst [vmem:[#allocation2 + $0xe8] sm:$0xff] %v868_v62  ;;  %v870_v44 = vadd.f32 %v869_v63, %v2439_v33 }
 0x3b3   :  { %v871_v24 = vpop.f32.mrf.mxu1 }
 0x3b4   :  { %904 = vst [vmem:[#allocation2 + $0xf0] sm:$0xff] %v870_v44  ;;  %v872_v25 = vadd.f32 %v871_v24, %v2441_v34 }
 0x3b6   :  { %905 = vst [vmem:[#allocation2 + $0xf8] sm:$0xff] %v872_v25 }
 0x3b7 LB: > { %v1595_v33 = vcombine.high %v2217_v6, %v2222_v7  ;;  %v1594_v34 = vcombine.low %v2217_v6, %v2222_v7  ;;  %v1593_v50 = vcombine.high %v2207_v4, %v2212_v5  ;;  %v970_v48 = vpack.c.bf16 %v2074_v47, %v2074_v47  ;;  %s2089_s27 = smov 64   ;;  %s1585_s28 = sshll.u32 %s2078_s8, 4  ;;  %s2078_s8 = sphi %s2483_s8, %s956_s8   ;;  %v2074_v47 = vphi %v2481_v47, %v1320_v47   ;;  %v2070_v29 = vphi %v2479_v29, %v1318_v29   ;;  %v2066_v28 = vphi %v2477_v28, %v2619_v28   ;;  %v2062_v27 = vphi %v2475_v27, %v1390_v27  }
 0x3b8   : > { %v1592_v35 = vcombine.low %v2207_v4, %v2212_v5  ;;  %v2088_v36 = vmov 0   ;;  %v1591_v37 = vcombine.high %v2197_v2, %v2202_v3  ;;  %v1590_v38 = vcombine.low %v2197_v2, %v2202_v3  ;;  %s963_s12 = sshra.s32 %s1585_s28, 3  ;;  %s1629_s30 = sadd.s32 8, %s1585_s28 }
 0x3b9   : > { %1025 = vmatprep.subr.bf16.mxu1 %v1595_v33  ;;  %1261 = vmatprep.subr.bf16.mxu0 %v1595_v33  ;;  %v1589_v39 = vcombine.high %v2187_v0, %v2192_v1  ;;  %v1588_v40 = vcombine.low %v2187_v0, %v2192_v1  ;;  %s1627_s4 = sshll.u32 %s963_s12, 4  ;;  %v1614_v44 = vcombine.high %v2297_v22, %v2302_v23  ;;  %s1239_s10 = sshra.s32 %s1629_s30, 3 }
 0x3ba   : > { %1026 = vmatpush1.bf16.msra.mxu1 %v1594_v34  ;;  %1049 = vmatprep.mubr.bf16.mxu1 %v2088_v36  ;;  %s967_s29 = scalar_lea.vmem [#allocation2], %s1627_s4  ;;  %v1613_v24 = vcombine.low %v2297_v22, %v2302_v23  ;;  %v1612_v25 = vcombine.high %v2287_v20, %v2292_v21  ;;  %v1611_v47 = vcombine.low %v2287_v20, %v2292_v21  ;;  %s1630_s15 = sshll.u32 %s1239_s10, 4 }
 0x3bb   : > { %972 = vrot.lane.b32.xlu0 %v970_v48, %s2089_s27  ;;  %1027 = vmatprep.subr.bf16.mxu1 %v1593_v50  ;;  %v1610_v33 = vcombine.high %v2277_v18, %v2282_v19  ;;  %v1607_v48 = vcombine.low %v2267_v16, %v2272_v17  ;;  %s1243_s1 = scalar_lea.vmem [#allocation2], %s1630_s15  ;;  %s956_s8 = sadd.s32 1, %s2078_s8  }
 0x3bc   : > { %1262 = vmatpush1.bf16.msra.mxu0 %v1594_v34  ;;  %1285 = vmatprep.mubr.bf16.mxu0 %v2088_v36  ;;  %v1609_v34 = vcombine.low %v2277_v18, %v2282_v19  ;;  %p953_p11 = scmp.ge.s32.totalorder %s956_s8, 8  }
 0x3bd   : > { %1263 = vmatprep.subr.bf16.mxu0 %v1593_v50  ;;  %v968_v45 = vld [vmem:[%s967_s29] sm:$0xff]  ;;  %v969_v46 = vld [vmem:[%s967_s29 + $0x8] sm:$0xff]  ;;  %v1608_v50 = vcombine.high %v2267_v16, %v2272_v17  ;;  %s2090_s11 = smov (%p953_p11), 64   ;;  %vm2092_vm5 = vmmov (%p953_p11), 0   ;;  %v1394_v0 = vld [vmem:[#allocation11 + $0x8] sm:$0xff] (%p953_p11)  ;;  %s2093_s17 = smov (%p953_p11), [#allocation12]  }
 0x3be   : > { %1028 = vmatpush1.bf16.msra.mxu1 %v1592_v35  ;;  %v1393_v1 = vld [vmem:[#allocation11] sm:$0xff] (%p953_p11)  ;;  %v1625_v3 = vld [vmem:[%s2617_s13] ss:$0 sm:$0xff] (%p953_p11)  ;;  %s1501_s18 = sshll.u32 (%p953_p11), %s2093_s17, 4  ;;  %s1502_s18 = int_to_ptr.vmem [resolvable:$true] %s1501_s18 }
 0x3bf   : > { %1029 = vmatprep.subr.bf16.mxu1 %v1591_v37  ;;  %s2012_s13 = scalar_lea.vmem (%p953_p11), %s1502_s18, 128  ;;  %p2017_p13 = scmp.lt.s32.totalorder (%p953_p11), %s1502_s18, %s1502_s18 }
 0x3c0   : > { %1264 = vmatpush1.bf16.msra.mxu0 %v1592_v35  ;;  %v1606_v35 = vcombine.high %v2257_v14, %v2262_v15  ;;  %p2013_p12 = scmp.ne.s32.totalorder (%p953_p11), %s1502_s18, %s2012_s13  ;;  %p2018_p0 = scmp.lt.s32.totalorder (%p953_p11), %s2012_s13, %s2012_s13 }
 0x3c1   : > { %1265 = vmatprep.subr.bf16.mxu0 %v1591_v37  ;;  %v1605_v37 = vcombine.low %v2257_v14, %v2262_v15 }
 0x3c2   : > { %1030 = vmatpush1.bf16.msra.mxu1 %v1590_v38  ;;  %p2019_p1 = por (%p953_p11), %p2018_p0, %p2017_p13 }
 0x3c3   : > { %1031 = vmatprep.subr.bf16.mxu1 %v1589_v39 }
 0x3c4   : > { %1266 = vmatpush1.bf16.msra.mxu0 %v1590_v38  ;;  %v1604_v38 = vcombine.high %v2247_v12, %v2252_v13  ;;  %p2020_p2 = pnand (%p953_p11), %p2019_p1, %p2013_p12 }
 0x3c5   : > { %1267 = vmatprep.subr.bf16.mxu0 %v1589_v39  ;;  %v1603_v39 = vcombine.low %v2247_v12, %v2252_v13 }
 0x3c6   : > { %1032 = vmatpush1.bf16.msra.mxu1 %v1588_v40 }
 0x3c7   : > { %1171 = vmatprep.subr.bf16.mxu1 %v1614_v44 }
 0x3c8   : > { %1268 = vmatpush1.bf16.msra.mxu0 %v1588_v40  ;;  %v1602_v40 = vcombine.high %v2237_v10, %v2242_v11 }
 0x3c9   : > { %1327 = vmatprep.subr.bf16.mxu0 %v1614_v44 }
 0x42d   : > { %v973_v41 = vpop.permute.xlu0 %972 }
 0x42e   : > { %1596 = vmatmul.mubr.msk.bf16.vlgmr.msra.gmra.mxu1 %vm554_vm2, %v973_v41 }
 0x42f   : > { %1203 = vmatprep.mubr.bf16.mxu1 %v2088_v36  ;;  %1172 = vmatpush1.bf16.msra.mxu1 %v1613_v24 }
 0x430   : > { %1173 = vmatprep.subr.bf16.mxu1 %v1612_v25 }
 0x433   : > { %1174 = vmatpush1.bf16.msra.mxu1 %v1611_v47 }
 0x434   : > { %1175 = vmatprep.subr.bf16.mxu1 %v1610_v33 }
 0x437   : > { %1176 = vmatpush1.bf16.msra.mxu1 %v1609_v34 }
 0x438   : > { %1177 = vmatprep.subr.bf16.mxu1 %v1608_v50 }
 0x43b   : > { %1178 = vmatpush1.bf16.msra.mxu1 %v1607_v48 }
 0x43c   : > { %1179 = vmatprep.subr.bf16.mxu1 %v1606_v35 }
 0x43f   : > { %1180 = vmatpush1.bf16.msra.mxu1 %v1605_v37 }
 0x440   : > { %1181 = vmatprep.subr.bf16.mxu1 %v1604_v38 }
 0x443   : > { %1182 = vmatpush1.bf16.msra.mxu1 %v1603_v39 }
 0x444   : > { %1183 = vmatprep.subr.bf16.mxu1 %v1602_v40 }
 0x4ee   : > { %v1051_v26 = vpop.f32.mrf.mxu1 }
 0x4ef   : > { %v1058_v42 = vadd.f32 %v1051_v26, %v968_v45 }
 0x4f0   : > { %v1053_v49 = vpop.f32.mrf.mxu1 }
 0x4f1   : > { %v1597_v51 = vmul.f32 -1.442695, %v1058_v42  ;;  %v1059_v52 = vadd.f32 %v1053_v49, %v969_v46  ;;  %v1601_v46 = vcombine.low %v2237_v10, %v2242_v11  ;;  %v1600_v42 = vcombine.high %v2227_v8, %v2232_v9 }
 0x4f2   : > { %v1055_v53 = vpop.f32.mrf.mxu1  ;;  %v1599_v49 = vcombine.low %v2227_v8, %v2232_v9 }
 0x4f3   : > { %1860 = vpow2.f32 %v1597_v51  ;;  %v1598_v54 = vmul.f32 -1.442695, %v1059_v52  ;;  %1184 = vmatpush1.bf16.msra.mxu1 %v1601_v46 }
 0x4f4   : > { %v1056_v55 = vpop.f32.mrf.mxu1  ;;  %1185 = vmatprep.subr.bf16.mxu1 %v1600_v42 }
 0x4f5   : > { %1862 = vpow2.f32 %v1598_v54 }
 0x4f6   : > { %1864 = vtanh.f32 %v1059_v52 }
 0x4f7   : > { %1186 = vmatpush1.bf16.msra.mxu1 %v1599_v49 }
 0x500   : > { %v1861_v43 = vpop.eup %1860 }
 0x501   : > { %v1068_v57 = vadd.f32 1.0, %v1861_v43 }
 0x502   : > { %v1863_v56 = vpop.eup %1862 }
 0x503   : > { %v1069_v58 = vadd.f32 1.0, %v1863_v56  ;;  %v1865_v59 = vpop.eup %1864  ;;  %v1245_v56 = vld [vmem:[%s1243_s1 + $0x8] sm:$0xff] }
 0x505   : > { %1866 = vrcp.f32 %v1069_v58 }
 0x506   : > { %1868 = vrcp.f32 %v1068_v57 }
 0x512   : > { %v1867_v60 = vpop.eup %1866 }
 0x513   : > { %v1869_v61 = vpop.eup %1868  ;;  %v1075_v62 = vsel %vm948_vm4, %v1865_v59, %v1867_v60 }
 0x514   : > { %v1077_v63 = vmul.f32 %v1869_v61, %v1075_v62  ;;  %v1076_v41 = vmul.f32 %v2070_v29, %v1869_v61 }
 0x516   : > { %1079 = vrot.lane.b32.xlu0 %v1077_v63, %s2089_s27 }
 0x588   : > { %v1080_v45 = vpop.permute.xlu0 %1079 }
 0x589   : > { %v2552_v26 = vadd.f32 %v1080_v45, %v1076_v41 }
 0x58b   : > { %1870 = vtanh.f32 %v2552_v26 }
 0x598   : > { %v1871_v51 = vpop.eup %1870 }
 0x599   : > { %v1084_v52 = vmul.f32 %v1871_v51, %v1075_v62 }
 0x59b   : > { %v1246_v29 = vpack.c.bf16 %v1084_v52, %v1084_v52 }
 0x59d   : > { %1248 = vrot.lane.b32.xlu1 %v1246_v29, %s2089_s27 }
 0x5a1   : > { %1086 = vrot.lane.b32.xlu1 %v1084_v52, %s2089_s27 }
 0x60f   : > { %v1249_v53 = vpop.permute.xlu1 %1248 }
 0x610   : > { %1620 = vmatmul.mubr.msk.bf16.vlgmr.msra.gmra.mxu0 %vm554_vm2, %v1249_v53 }
 0x611   : > { %1328 = vmatpush1.bf16.msra.mxu0 %v1613_v24  ;;  %1359 = vmatprep.mubr.bf16.mxu0 %v2088_v36 }
 0x612   : > { %1329 = vmatprep.subr.bf16.mxu0 %v1612_v25 }
 0x613   : > { %v1087_v54 = vpop.permute.xlu1 %1086 }
 0x614   : > { %v1089_v55 = vsel %vm554_vm2, %v1087_v54, %v2066_v28  ;;  %v1244_v28 = vld [vmem:[%s1243_s1] sm:$0xff] }
 0x615   : > { %v1090_v43 = vpack.c.bf16 %v1089_v55, %v1089_v55  ;;  %1330 = vmatpush1.bf16.msra.mxu0 %v1611_v47 }
 0x616   : > { %1331 = vmatprep.subr.bf16.mxu0 %v1610_v33 }
 0x617   : > { %1204 = vmatmul.mubr.bf16.vlgmr.msra.gmra.mxu1 %v1090_v43 }
 0x619   : > { %1332 = vmatpush1.bf16.msra.mxu0 %v1609_v34 }
 0x61a   : > { %1333 = vmatprep.subr.bf16.mxu0 %v1608_v50 }
 0x61d   : > { %1334 = vmatpush1.bf16.msra.mxu0 %v1607_v48 }
 0x61e   : > { %1335 = vmatprep.subr.bf16.mxu0 %v1606_v35 }
 0x621   : > { %1336 = vmatpush1.bf16.msra.mxu0 %v1605_v37 }
 0x622   : > { %1337 = vmatprep.subr.bf16.mxu0 %v1604_v38 }
 0x625   : > { %1338 = vmatpush1.bf16.msra.mxu0 %v1603_v39 }
 0x626   : > { %1339 = vmatprep.subr.bf16.mxu0 %v1602_v40 }
 0x629   : > { %1340 = vmatpush1.bf16.msra.mxu0 %v1601_v46 }
 0x62a   : > { %1341 = vmatprep.subr.bf16.mxu0 %v1600_v42 }
 0x62d   : > { %1342 = vmatpush1.bf16.msra.mxu0 %v1599_v49 }
 0x6d0   : > { %v1287_v36 = vpop.f32.mrf.mxu0 }
 0x6d1   : > { %v1294_v57 = vadd.f32 %v1287_v36, %v1244_v28 }
 0x6d2   : > { %v1289_v58 = vpop.f32.mrf.mxu0 }
 0x6d3   : > { %v1621_v59 = vmul.f32 -1.442695, %v1294_v57  ;;  %v1295_v60 = vadd.f32 %v1289_v58, %v1245_v56 }
 0x6d4   : > { %v1291_v61 = vpop.f32.mrf.mxu0 }
 0x6d5   : > { %1872 = vpow2.f32 %v1621_v59  ;;  %v1622_v62 = vmul.f32 -1.442695, %v1295_v60 }
 0x6d6   : > { %v1292_v63 = vpop.f32.mrf.mxu0 }
 0x6d7   : > { %1874 = vpow2.f32 %v1622_v62  ;;  %v1205_v44 = vpop.f32.mrf.mxu1 }
 0x6d8   : > { %v1206_v24 = vadd.f32 %v1205_v44, %v2429_v30 }
 0x6d9   : > { %v1207_v25 = vpop.f32.mrf.mxu1 }
 0x6da   : > { %v1615_v47 = vmul.f32 -1.442695, %v1206_v24  ;;  %v1208_v33 = vadd.f32 %v1207_v25, %v2431_v31 }
 0x6db   : > { %v1209_v34 = vpop.f32.mrf.mxu1 }
 0x6dc   : > { %1876 = vpow2.f32 %v1615_v47  ;;  %v1616_v50 = vmul.f32 -1.442695, %v1208_v33 }
 0x6dd   : > { %v1210_v48 = vpop.f32.mrf.mxu1 }
 0x6de   : > { %1878 = vpow2.f32 %v1616_v50 }
 0x6df   : > { %1880 = vtanh.f32 %v1295_v60 }
 0x6e2   : > { %v1873_v35 = vpop.eup %1872 }
 0x6e3   : > { %v1304_v38 = vadd.f32 1.0, %v1873_v35 }
 0x6e4   : > { %v1875_v37 = vpop.eup %1874 }
 0x6e5   : > { %v1305_v39 = vadd.f32 1.0, %v1875_v37 }
 0x6e7   : > { %1882 = vrcp.f32 %v1305_v39 }
 0x6e8   : > { %1884 = vrcp.f32 %v1304_v38 }
 0x6e9   : > { %v1877_v40 = vpop.eup %1876  ;;  %1886 = vtanh.f32 %v1208_v33 }
 0x6ea   : > { %v1220_v45 = vadd.f32 1.0, %v1877_v40 }
 0x6eb   : > { %v1879_v41 = vpop.eup %1878 }
 0x6ec   : > { %v1221_v46 = vadd.f32 1.0, %v1879_v41  ;;  %v1881_v42 = vpop.eup %1880 }
 0x6ee   : > { %1888 = vrcp.f32 %v1221_v46 }
 0x6ef   : > { %1890 = vrcp.f32 %v1220_v45 }
 0x6f4   : > { %v1883_v49 = vpop.eup %1882 }
 0x6f5   : > { %v1885_v51 = vpop.eup %1884  ;;  %v1311_v52 = vsel %vm948_vm4, %v1881_v42, %v1883_v49 }
 0x6f6   : > { %v1313_v29 = vmul.f32 %v1885_v51, %v1311_v52  ;;  %v1887_v53 = vpop.eup %1886  ;;  %v1312_v36 = vmul.f32 %v1885_v51, %v2552_v26 }
 0x6f8   : > { %1315 = vrot.lane.b32.xlu0 %v1313_v29, %s2089_s27 }
 0x6fb   : > { %v1889_v54 = vpop.eup %1888 }
 0x6fc   : > { %v1891_v55 = vpop.eup %1890  ;;  %v1227_v43 = vsel %vm948_vm4, %v1887_v53, %v1889_v54 }
 0x6fd   : > { %v1229_v28 = vmul.f32 %v1891_v55, %v1227_v43  ;;  %v1228_v59 = vmul.f32 %v2062_v27, %v1891_v55  ;;  %v1400_v55 = vld [vmem:[#allocation11 + $0x38] sm:$0xff] (%p953_p11) }
 0x6ff   : > { %1231 = vrot.lane.b32.xlu1 %v1229_v28, %s2089_s27 }
 0x76a   : > { %v1316_v56 = vpop.permute.xlu0 %1315 }
 0x76b   : > { %v1318_v29 = vadd.f32 %v1316_v56, %v1312_v36   ;;  %v1399_v36 = vld [vmem:[#allocation11 + $0x30] sm:$0xff] (%p953_p11)  ;;  %v1398_v56 = vld [vmem:[#allocation11 + $0x28] sm:$0xff] (%p953_p11) }
 0x76d   : > { %1892 = vtanh.f32 %v1318_v29 }
 0x771   : > { %v1232_v58 = vpop.permute.xlu1 %1231 }
 0x772   : > { %v1234_v60 = vadd.f32 %v1232_v58, %v1228_v59  ;;  %v1395_v58 = vld [vmem:[#allocation11 + $0x10] sm:$0xff] (%p953_p11) }
 0x774   : > { %1894 = vtanh.f32 %v1234_v60 }
 0x77a   : > { %v1893_v57 = vpop.eup %1892 }
 0x77b   : > { %v1320_v47 = vmul.f32 %v1893_v57, %v1311_v52   ;;  %v1397_v57 = vld [vmem:[#allocation11 + $0x20] sm:$0xff] (%p953_p11) }
 0x77d   : > { %1322 = vrot.lane.b32.xlu0 %v1320_v47, %s2089_s27  ;;  %v1396_v47 = vld [vmem:[#allocation11 + $0x18] sm:$0xff] (%p953_p11) }
 0x781   : > { %v1895_v61 = vpop.eup %1894 }
 0x782   : > { %v1236_v62 = vmul.f32 %v1895_v61, %v1227_v43  ;;  %v2091_v43 = vmov (%p953_p11), 0.0  }
 0x783   :  { %1752 = vmatprep.subr.mxu0 (%p953_p11), %v2091_v43 }
 0x7ef   : > { %v1323_v63 = vpop.permute.xlu0 %1322 }
 0x7f0   : > { %v1325_v44 = vsel %vm554_vm2, %v1323_v63, %v1236_v62 }
 0x7f1   : > { %v1326_v24 = vpack.c.bf16 %v1325_v44, %v1325_v44 }
 0x7f3   : > { %1360 = vmatmul.mubr.bf16.vlgmr.msra.gmra.mxu0 %v1326_v24 }
 0x7f4   :  { %1753 = vmatpush3.msra.mxu0 (%p953_p11), %v1400_v55  ;;  %1768 = vmatprep.mubr.msk.f32.mxu0 (%p953_p11), %vm2092_vm5, %v2091_v43 }
 0x7f5   :  { %1754 = vmatprep.subr.mxu0 (%p953_p11), %v2091_v43 }
 0x7f6   :  { %1755 = vmatpush3.msra.mxu0 (%p953_p11), %v1399_v36 }
 0x7f7   :  { %1756 = vmatprep.subr.mxu0 (%p953_p11), %v2091_v43 }
 0x7f8   :  { %1757 = vmatpush3.msra.mxu0 (%p953_p11), %v1398_v56 }
 0x7f9   :  { %1758 = vmatprep.subr.mxu0 (%p953_p11), %v2091_v43 }
 0x7fa   :  { %1759 = vmatpush3.msra.mxu0 (%p953_p11), %v1397_v57 }
 0x7fb   :  { %1760 = vmatprep.subr.mxu0 (%p953_p11), %v2091_v43 }
 0x7fc   :  { %1761 = vmatpush3.msra.mxu0 (%p953_p11), %v1396_v47 }
 0x7fd   :  { %1762 = vmatprep.subr.mxu0 (%p953_p11), %v2091_v43 }
 0x7fe   :  { %1763 = vmatpush3.msra.mxu0 (%p953_p11), %v1395_v58 }
 0x7ff   :  { %1764 = vmatprep.subr.mxu0 (%p953_p11), %v2091_v43 }
 0x800   :  { %1765 = vmatpush3.msra.mxu0 (%p953_p11), %v1394_v0 }
 0x801   :  { %1766 = vmatprep.subr.mxu0 (%p953_p11), %v2091_v43 }
 0x802   :  { %1767 = vmatpush3.msra.mxu0 (%p953_p11), %v1393_v1 }
 0x8b3   : > { %v1361_v26 = vpop.f32.mrf.mxu0 }
 0x8b4   : > { %v1362_v25 = vadd.f32 %v1361_v26, %v2429_v30 }
 0x8b5   : > { %v1363_v33 = vpop.f32.mrf.mxu0 }
 0x8b6   : > { %v1623_v34 = vmul.f32 -1.442695, %v1362_v25  ;;  %v1364_v50 = vadd.f32 %v1363_v33, %v2431_v31 }
 0x8b7   : > { %v1365_v48 = vpop.f32.mrf.mxu0 }
 0x8b8   : > { %1896 = vpow2.f32 %v1623_v34  ;;  %v1624_v35 = vmul.f32 -1.442695, %v1364_v50 }
 0x8b9   : > { %v1366_v27 = vpop.f32.mrf.mxu0 }
 0x8ba   : > { %1898 = vpow2.f32 %v1624_v35 }
 0x8bb   : > { %1900 = vtanh.f32 %v1364_v50 }
 0x8c5   : > { %v1897_v37 = vpop.eup %1896 }
 0x8c6   : > { %v1376_v39 = vadd.f32 1.0, %v1897_v37 }
 0x8c7   : > { %v1899_v38 = vpop.eup %1898 }
 0x8c8   : > { %v1377_v40 = vadd.f32 1.0, %v1899_v38  ;;  %v1901_v41 = vpop.eup %1900 }
 0x8ca   : > { %1902 = vrcp.f32 %v1377_v40 }
 0x8cb   : > { %1904 = vrcp.f32 %v1376_v39 }
 0x8d7   : > { %v1903_v45 = vpop.eup %1902 }
 0x8d8   : > { %v1905_v46 = vpop.eup %1904  ;;  %v1383_v42 = vsel %vm948_vm4, %v1901_v41, %v1903_v45 }
 0x8d9   : > { %v1385_v49 = vmul.f32 %v1905_v46, %v1383_v42  ;;  %v1384_v51 = vmul.f32 %v1905_v46, %v1234_v60 }
 0x8db   : > { %1387 = vrot.lane.b32.xlu1 %v1385_v49, %s2089_s27 }
 0x94d   : > { %v1388_v52 = vpop.permute.xlu1 %1387 }
 0x94e   : > { %v1390_v27 = vadd.f32 %v1388_v52, %v1384_v51  }
 0x950   : > { %1906 = vtanh.f32 %v1390_v27 }
 0x95c   :  { %955 = sbr.rel (!%p953_p11) target bundleno = 951 (0x3b7), region = 105 }
 0x95d   : > { %v1907_v53 = vpop.eup %1906 }
 0x95e   : > { %v1392_v54 = vmul.f32 %v1907_v53, %v1383_v42  }
 0x960   : > { %v2619_v28 = vmov %v1392_v54  ;;  %1409 = vrot.lane.b32.xlu0 (%p953_p11), %v1392_v54, %s2090_s11 }
 0x9d2   :  { %v1410_v2 = vpop.permute.xlu0 %1409 }
 0x9d3   :  { %1769 = vmatmul.mubr.msk.f32.vlgmr.msra.gmra.mxu0 %vm554_vm2, %v1410_v2 }
 0xa93   :  { %v1479_v4 = vpop.f32.mrf.mxu0 }
 0xa94   :  { %v1480_v5 = vadd.f32 %v1625_v3, %v1479_v4 }
 0xa95   :  { %v1770_v6 = vpop.f32.mrf.mxu0 }
 0xa96   :  { %1483 = vmax.xlane.f32.xlu0 %v1480_v5 }
 0xb1f   :  { %v1484_v7 = vpop.xlane.xlu0 %1483 }
 0xb20   :  { %v1485_v8 = vsub.f32 %v1480_v5, %v1484_v7 }
 0xb22   :  { %v1486_v9 = vmul.f32 1.442695, %v1485_v8 }
 0xb24   :  { %1908 = vpow2.f32 %v1486_v9 }
 0xb31   :  { %v1909_v10 = vpop.eup %1908 }
 0xb32   :  { %1488 = vadd.xlane.f32.xlu1 %v1909_v10 }
 0xbbb   :  { %v1489_v11 = vpop.xlane.xlu1 %1488 }
 0xbbc   :  { %1910 = vlog2.f32 %v1489_v11 }
 0xbc9   :  { %v1911_v12 = vpop.eup %1910 }
 0xbca   :  { %v1491_v13 = vmul.f32 0.6931472, %v1911_v12 }
 0xbcc   :  { %v1492_v14 = vadd.f32 %v1491_v13, %v1484_v7 }
 0xbce   :  { %v1493_v15 = vsub.f32 %v1480_v5, %v1492_v14 }
 0xbd0   :  { %1494 = vst [vmem:[#allocation12] sm:$0xff] %v1493_v15 }
 0xbd1   :  { %2023 = shalt.err (!%p2020_p2)
}
 0xbd2   :  { %1504 = dma.vmem_to_hbm [thread:$0]  %s1502_s18, 128, %s2618_s14, [#allocation5]  }
 0xbd3   :  { %2058 = dma.done.wait [#allocation5], 128  }
 0xbd4   :  { %2059 = vsyncadd [#allocation5], 4294967168 }
 0xbd5   :  { %1508 = vsyncpa [#allocation4], 1 }
 0xbd6   :  { %1509 = vsyncpa [#allocation7], 1 }
 0xbd7   :  { %1510 = vsyncpa [#allocation10], 1 }
 0xbd8   :  { %1511 = vsyncpa [#allocation5], 1 }

</bundles_post_ra>
